<compile_context>
chip_gen: v6e
topology: v6e:2x2x1
jax: 0.10.0
libtpu: 0.0.40
codegen_flags: <defaults>
</compile_context>

<pallas_src>
import functools

import jax
import jax.numpy as jnp
from jax import lax
from jax.experimental import pallas as pl
from jax.experimental.pallas import tpu as pltpu


def _round_up(x, m):
    return (x + m - 1) // m * m


def _dft_decomp_kernel(top_k, f_pad, x_ref, fwd_ref, inv_ref, season_ref, trend_ref):
    x = x_ref[...]                                                    # [TN, Lp] f32

    # --- forward rfft: one fused MXU matmul, Re|Im packed along lanes ---
    xf = jnp.dot(x, fwd_ref[...], preferred_element_type=jnp.float32,
                 precision=lax.Precision.HIGHEST)                     # [TN, 2*Fp]
    xr = xf[:, :f_pad]
    xi = xf[:, f_pad:]

    # --- squared magnitude (sqrt is monotone -> identical top-k mask) ---
    mag2 = xr * xr + xi * xi                                          # [TN, Fp]
    col = lax.broadcasted_iota(jnp.int32, mag2.shape, 1)
    mag2 = jnp.where(col == 0, 0.0, mag2)                             # freq[:, :, 0] = 0

    # --- k-th largest along the frequency axis: k passes of (max, remove one) ---
    # Removing exactly ONE occurrence of the current max per pass reproduces
    # torch.topk's k-th value even with ties.  Padded frequency columns have
    # mag2 == 0 exactly, so they never displace a real frequency from the top-k.
    # TODO(synk): if top_k >= number of nonzero bins, torch.topk would error /
    # the threshold collapses to 0; that edge case is not guarded here.
    work = mag2
    thr = jnp.zeros((mag2.shape[0], 1), jnp.float32)
    for _ in range(top_k):
        thr = jnp.max(work, axis=-1, keepdims=True)                   # current max
        is_max = work >= thr
        first = jnp.min(jnp.where(is_max, col, f_pad), axis=-1, keepdims=True)
        work = jnp.where(col == first, -jnp.inf, work)                # drop one occurrence

    # --- mask spectrum and inverse rfft (single fused MXU matmul) ---
    mask = (mag2 >= thr).astype(jnp.float32)                          # [TN, Fp]
    masked = xf * jnp.concatenate([mask, mask], axis=-1)              # [TN, 2*Fp]
    season = jnp.dot(masked, inv_ref[...], preferred_element_type=jnp.float32,
                     precision=lax.Precision.HIGHEST)                 # [TN, Lp]

    season_ref[...] = season
    trend_ref[...] = x - season


def dft_decomposition(x, top_k=5, tile_n=None):
    """x: [B, C, L] float -> (x_season, x_trend), both [B, C, L]."""
    B, C, L = x.shape
    F = L // 2 + 1
    N = B * C

    Lp = _round_up(L, 128)          # lane-dense time axis
    Fp = _round_up(F, 128)          # lane-dense frequency axis

    # --- forward real-DFT basis, packed [Lp, 2*Fp] = [cos | -sin], zero padded ---
    t = jnp.arange(L, dtype=jnp.float32)[:, None]                     # [L, 1]
    f = jnp.arange(F, dtype=jnp.float32)[None, :]                     # [1, F]
    ang = 2.0 * jnp.pi * t * f / L                                    # [L, F]
    cosf = jnp.cos(ang)
    sinf = -jnp.sin(ang)
    fwd = jnp.zeros((Lp, 2 * Fp), jnp.float32)
    fwd = fwd.at[:L, :F].set(cosf).at[:L, Fp:Fp + F].set(sinf)

    # --- inverse real-DFT basis, packed [2*Fp, Lp] = [icos ; isin], zero padded ---
    w = jnp.full((F,), 2.0, jnp.float32).at[0].set(1.0)
    if L % 2 == 0:
        w = w.at[L // 2].set(1.0)
    icos = (w[:, None] * jnp.cos(ang.T)) / L                          # [F, L]
    isin = (-w[:, None] * jnp.sin(ang.T)) / L                         # [F, L]
    inv = jnp.zeros((2 * Fp, Lp), jnp.float32)
    inv = inv.at[:F, :L].set(icos).at[Fp:Fp + F, :L].set(isin)

    # --- row tiling over the flattened B*C axis ---
    if tile_n is None:
        tile_n = 256                      # fits comfortably in VMEM on v5e/v6e/v7x
    tile_n = max(8, _round_up(min(int(tile_n), max(N, 1)), 8))
    Np = _round_up(N, tile_n)
    xp = jnp.zeros((Np, Lp), jnp.float32).at[:N, :L].set(
        x.reshape(N, L).astype(jnp.float32))

    kernel = functools.partial(_dft_decomp_kernel, int(top_k), Fp)
    season_p, trend_p = pl.pallas_call(
        kernel,
        out_shape=(jax.ShapeDtypeStruct((Np, Lp), jnp.float32),
                   jax.ShapeDtypeStruct((Np, Lp), jnp.float32)),
        grid=(Np // tile_n,),
        in_specs=[pl.BlockSpec((tile_n, Lp), lambda i: (i, 0)),
                  pl.BlockSpec((Lp, 2 * Fp), lambda i: (0, 0)),
                  pl.BlockSpec((2 * Fp, Lp), lambda i: (0, 0))],
        out_specs=(pl.BlockSpec((tile_n, Lp), lambda i: (i, 0)),
                   pl.BlockSpec((tile_n, Lp), lambda i: (i, 0))),
        compiler_params=pltpu.CompilerParams(
            dimension_semantics=("parallel",),
            vmem_limit_bytes=48 * 1024 * 1024),
    )(xp, fwd, inv)

    season = season_p[:N, :L].reshape(B, C, L).astype(x.dtype)
    trend = trend_p[:N, :L].reshape(B, C, L).astype(x.dtype)
    return season, trend


def _reference(x, top_k=5):
    xf = jnp.fft.rfft(x)
    freq = jnp.abs(xf)
    freq = freq.at[:, :, 0].set(0.0)
    thr = lax.top_k(freq, top_k)[0][..., -1:]
    mask = freq >= thr
    xf = xf * mask
    season = jnp.fft.irfft(xf, n=x.shape[-1])
    return season, x - season


if __name__ == "__main__":
    key = jax.random.PRNGKey(0)
    B, C, L = 4, 4, 16
    x = jax.random.normal(key, (B, C, L), dtype=jnp.float32)

    # tile_n=8 -> 2 grid steps: exercises the row tiling / pipelining path.
    season, trend = dft_decomposition(x, top_k=5, tile_n=8)
    season = jax.block_until_ready(season)
    trend = jax.block_until_ready(trend)

    ref_season, ref_trend = _reference(x, top_k=5)
    assert jnp.allclose(season, ref_season, rtol=1e-3, atol=1e-3), "season mismatch"
    assert jnp.allclose(trend, ref_trend, rtol=1e-3, atol=1e-3), "trend mismatch"

    print("KERNEL_OK")
</pallas_src>

<mosaic_0001>
module attributes {stable_mosaic.version = 11 : i64} {
  func.func @_dft_decomp_kernel(%arg0: i32, %arg1: memref<8x128xf32, #tpu.memory_space<vmem>>, %arg2: memref<128x256xf32, #tpu.memory_space<vmem>>, %arg3: memref<256x128xf32, #tpu.memory_space<vmem>>, %arg4: memref<8x128xf32, #tpu.memory_space<vmem>>, %arg5: memref<8x128xf32, #tpu.memory_space<vmem>>) attributes {dimension_semantics = [#tpu.dimension_semantics<parallel>], iteration_bounds = array<i64: 2>, scalar_prefetch = 0 : i64, scratch_operands = 0 : i64, tpu.core_type = #tpu.core_type<tc>, window_params = [{transform_indices = @transform_0, window_bounds = array<i64: 8, 128>}, {pipeline_mode = #tpu.pipeline_mode<synchronous>, transform_indices = @transform_1, window_bounds = array<i64: 128, 256>}, {pipeline_mode = #tpu.pipeline_mode<synchronous>, transform_indices = @transform_2, window_bounds = array<i64: 256, 128>}, {transform_indices = @transform_3, window_bounds = array<i64: 8, 128>}, {transform_indices = @transform_4, window_bounds = array<i64: 8, 128>}]} {
    %c0 = arith.constant 0 : index
    %c0_0 = arith.constant 0 : index
    %0 = vector.load %arg1[%c0, %c0_0] : memref<8x128xf32, #tpu.memory_space<vmem>>, vector<8x128xf32>
    %c0_1 = arith.constant 0 : index
    %c0_2 = arith.constant 0 : index
    %1 = vector.load %arg2[%c0_1, %c0_2] : memref<128x256xf32, #tpu.memory_space<vmem>>, vector<128x256xf32>
    %cst = arith.constant dense<0.000000e+00> : vector<8x256xf32>
    %2 = tpu.matmul %0, %1, %cst {dimension_numbers = #tpu.dot_dimension_numbers<[1], [0], [0], [1], [0, 0, 1, 1], [], []>, precision = #tpu.contract_precision<fp32>} : vector<8x128xf32>, vector<128x256xf32>, vector<8x256xf32> -> vector<8x256xf32>
    %3 = vector.extract_strided_slice %2 {offsets = [0, 0], sizes = [8, 128], strides = [1, 1]} : vector<8x256xf32> to vector<8x128xf32>
    %4 = vector.extract_strided_slice %2 {offsets = [0, 128], sizes = [8, 128], strides = [1, 1]} : vector<8x256xf32> to vector<8x128xf32>
    %5 = arith.mulf %3, %3 : vector<8x128xf32>
    %6 = arith.mulf %4, %4 : vector<8x128xf32>
    %7 = arith.addf %5, %6 : vector<8x128xf32>
    %8 = tpu.iota {dimensions = array<i32: 1>} : vector<8x128xi32>
    %c0_i32 = arith.constant 0 : i32
    %9 = vector.broadcast %c0_i32 : i32 to vector<8x128xi32>
    %10 = arith.cmpi eq, %8, %9 : vector<8x128xi32>
    %cst_3 = arith.constant 0.000000e+00 : f32
    %11 = vector.broadcast %cst_3 : f32 to vector<8x128xf32>
    %12 = arith.select %10, %11, %7 : vector<8x128xi1>, vector<8x128xf32>
    %cst_4 = arith.constant dense<0xFF800000> : vector<8xf32>
    %13 = vector.multi_reduction <maximumf>, %12, %cst_4 [1] : vector<8x128xf32> to vector<8xf32>
    %14 = vector.shape_cast %13 : vector<8xf32> to vector<8x1xf32>
    %15 = vector.broadcast %14 : vector<8x1xf32> to vector<8x128xf32>
    %16 = arith.cmpf oge, %12, %15 : vector<8x128xf32>
    %c128_i32 = arith.constant 128 : i32
    %17 = vector.broadcast %c128_i32 : i32 to vector<8x128xi32>
    %18 = arith.select %16, %8, %17 : vector<8x128xi1>, vector<8x128xi32>
    %cst_5 = arith.constant dense<2147483647> : vector<8xi32>
    %19 = vector.multi_reduction <minsi>, %18, %cst_5 [1] : vector<8x128xi32> to vector<8xi32>
    %20 = vector.shape_cast %19 : vector<8xi32> to vector<8x1xi32>
    %21 = vector.broadcast %20 : vector<8x1xi32> to vector<8x128xi32>
    %22 = arith.cmpi eq, %8, %21 : vector<8x128xi32>
    %cst_6 = arith.constant 0xFF800000 : f32
    %23 = vector.broadcast %cst_6 : f32 to vector<8x128xf32>
    %24 = arith.select %22, %23, %12 : vector<8x128xi1>, vector<8x128xf32>
    %cst_7 = arith.constant dense<0xFF800000> : vector<8xf32>
    %25 = vector.multi_reduction <maximumf>, %24, %cst_7 [1] : vector<8x128xf32> to vector<8xf32>
    %26 = vector.shape_cast %25 : vector<8xf32> to vector<8x1xf32>
    %27 = vector.broadcast %26 : vector<8x1xf32> to vector<8x128xf32>
    %28 = arith.cmpf oge, %24, %27 : vector<8x128xf32>
    %c128_i32_8 = arith.constant 128 : i32
    %29 = vector.broadcast %c128_i32_8 : i32 to vector<8x128xi32>
    %30 = arith.select %28, %8, %29 : vector<8x128xi1>, vector<8x128xi32>
    %cst_9 = arith.constant dense<2147483647> : vector<8xi32>
    %31 = vector.multi_reduction <minsi>, %30, %cst_9 [1] : vector<8x128xi32> to vector<8xi32>
    %32 = vector.shape_cast %31 : vector<8xi32> to vector<8x1xi32>
    %33 = vector.broadcast %32 : vector<8x1xi32> to vector<8x128xi32>
    %34 = arith.cmpi eq, %8, %33 : vector<8x128xi32>
    %cst_10 = arith.constant 0xFF800000 : f32
    %35 = vector.broadcast %cst_10 : f32 to vector<8x128xf32>
    %36 = arith.select %34, %35, %24 : vector<8x128xi1>, vector<8x128xf32>
    %cst_11 = arith.constant dense<0xFF800000> : vector<8xf32>
    %37 = vector.multi_reduction <maximumf>, %36, %cst_11 [1] : vector<8x128xf32> to vector<8xf32>
    %38 = vector.shape_cast %37 : vector<8xf32> to vector<8x1xf32>
    %39 = vector.broadcast %38 : vector<8x1xf32> to vector<8x128xf32>
    %40 = arith.cmpf oge, %36, %39 : vector<8x128xf32>
    %c128_i32_12 = arith.constant 128 : i32
    %41 = vector.broadcast %c128_i32_12 : i32 to vector<8x128xi32>
    %42 = arith.select %40, %8, %41 : vector<8x128xi1>, vector<8x128xi32>
    %cst_13 = arith.constant dense<2147483647> : vector<8xi32>
    %43 = vector.multi_reduction <minsi>, %42, %cst_13 [1] : vector<8x128xi32> to vector<8xi32>
    %44 = vector.shape_cast %43 : vector<8xi32> to vector<8x1xi32>
    %45 = vector.broadcast %44 : vector<8x1xi32> to vector<8x128xi32>
    %46 = arith.cmpi eq, %8, %45 : vector<8x128xi32>
    %cst_14 = arith.constant 0xFF800000 : f32
    %47 = vector.broadcast %cst_14 : f32 to vector<8x128xf32>
    %48 = arith.select %46, %47, %36 : vector<8x128xi1>, vector<8x128xf32>
    %cst_15 = arith.constant dense<0xFF800000> : vector<8xf32>
    %49 = vector.multi_reduction <maximumf>, %48, %cst_15 [1] : vector<8x128xf32> to vector<8xf32>
    %50 = vector.shape_cast %49 : vector<8xf32> to vector<8x1xf32>
    %51 = vector.broadcast %50 : vector<8x1xf32> to vector<8x128xf32>
    %52 = arith.cmpf oge, %48, %51 : vector<8x128xf32>
    %c128_i32_16 = arith.constant 128 : i32
    %53 = vector.broadcast %c128_i32_16 : i32 to vector<8x128xi32>
    %54 = arith.select %52, %8, %53 : vector<8x128xi1>, vector<8x128xi32>
    %cst_17 = arith.constant dense<2147483647> : vector<8xi32>
    %55 = vector.multi_reduction <minsi>, %54, %cst_17 [1] : vector<8x128xi32> to vector<8xi32>
    %56 = vector.shape_cast %55 : vector<8xi32> to vector<8x1xi32>
    %57 = vector.broadcast %56 : vector<8x1xi32> to vector<8x128xi32>
    %58 = arith.cmpi eq, %8, %57 : vector<8x128xi32>
    %cst_18 = arith.constant 0xFF800000 : f32
    %59 = vector.broadcast %cst_18 : f32 to vector<8x128xf32>
    %60 = arith.select %58, %59, %48 : vector<8x128xi1>, vector<8x128xf32>
    %cst_19 = arith.constant dense<0xFF800000> : vector<8xf32>
    %61 = vector.multi_reduction <maximumf>, %60, %cst_19 [1] : vector<8x128xf32> to vector<8xf32>
    %62 = vector.shape_cast %61 : vector<8xf32> to vector<8x1xf32>
    %63 = vector.broadcast %62 : vector<8x1xf32> to vector<8x128xf32>
    %64 = arith.cmpf oge, %12, %63 : vector<8x128xf32>
    %65 = arith.extui %64 : vector<8x128xi1> to vector<8x128xi32>
    %66 = arith.sitofp %65 : vector<8x128xi32> to vector<8x128xf32>
    %67 = tpu.concatenate %66, %66 in 1 : vector<8x128xf32>, vector<8x128xf32> -> vector<8x256xf32>
    %68 = arith.mulf %2, %67 : vector<8x256xf32>
    %c0_20 = arith.constant 0 : index
    %c0_21 = arith.constant 0 : index
    %69 = vector.load %arg3[%c0_20, %c0_21] : memref<256x128xf32, #tpu.memory_space<vmem>>, vector<256x128xf32>
    %cst_22 = arith.constant dense<0.000000e+00> : vector<8x128xf32>
    %70 = tpu.matmul %68, %69, %cst_22 {dimension_numbers = #tpu.dot_dimension_numbers<[1], [0], [0], [1], [0, 0, 1, 1], [], []>, precision = #tpu.contract_precision<fp32>} : vector<8x256xf32>, vector<256x128xf32>, vector<8x128xf32> -> vector<8x128xf32>
    %c0_23 = arith.constant 0 : index
    %c0_24 = arith.constant 0 : index
    %71 = vector.load %arg4[%c0_23, %c0_24] : memref<8x128xf32, #tpu.memory_space<vmem>>, vector<8x128xf32>
    tpu.vector_store %arg4[%c0_23, %c0_24], %70 {strides = array<i32>} : memref<8x128xf32, #tpu.memory_space<vmem>>, vector<8x128xf32>,
    %72 = arith.subf %0, %70 : vector<8x128xf32>
    %c0_25 = arith.constant 0 : index
    %c0_26 = arith.constant 0 : index
    %73 = vector.load %arg5[%c0_25, %c0_26] : memref<8x128xf32, #tpu.memory_space<vmem>>, vector<8x128xf32>
    tpu.vector_store %arg5[%c0_25, %c0_26], %72 {strides = array<i32>} : memref<8x128xf32, #tpu.memory_space<vmem>>, vector<8x128xf32>,
    return
  }
  func.func @transform_0(%arg0: i32) -> (i32, i32) {
    %c0_i32 = arith.constant 0 : i32
    %c0_i32_0 = arith.constant 0 : i32
    return %arg0, %c0_i32 : i32, i32
  }
  func.func @transform_1(%arg0: i32) -> (i32, i32) {
    %c0_i32 = arith.constant 0 : i32
    %c0_i32_0 = arith.constant 0 : i32
    %c0_i32_1 = arith.constant 0 : i32
    return %c0_i32, %c0_i32_0 : i32, i32
  }
  func.func @transform_2(%arg0: i32) -> (i32, i32) {
    %c0_i32 = arith.constant 0 : i32
    %c0_i32_0 = arith.constant 0 : i32
    %c0_i32_1 = arith.constant 0 : i32
    return %c0_i32, %c0_i32_0 : i32, i32
  }
  func.func @transform_3(%arg0: i32) -> (i32, i32) {
    %c0_i32 = arith.constant 0 : i32
    %c0_i32_0 = arith.constant 0 : i32
    return %arg0, %c0_i32 : i32, i32
  }
  func.func @transform_4(%arg0: i32) -> (i32, i32) {
    %c0_i32 = arith.constant 0 : i32
    %c0_i32_0 = arith.constant 0 : i32
    return %arg0, %c0_i32 : i32, i32
  }
}

</mosaic_0001>

<bundles_post_ra>
// kernel: tpu_custom_call.1
= control target key start
LH: loop header
LB: loop body
LE: loop exit
PB: predicated region body
PF: predicated region fallthrough
CT: control target
= control target key end

     0   :  { %10 = vsyncpa [#allocation3], 0  ;;  %s4157_s0 = inlined_call_operand.hbm [shape: f32[16,128], index: 0, kind: input, shape index: {}]   ;;  %s4158_s1 = inlined_call_operand.hbm [shape: f32[128,256], index: 1, kind: input, shape index: {}]   ;;  %s4159_s2 = inlined_call_operand.hbm [shape: f32[256,128], index: 2, kind: input, shape index: {}]   ;;  %s4160_s3 = inlined_call_operand.hbm [shape: f32[16,128], index: 3, kind: output, shape index: {0}]   ;;  %s4161_s4 = inlined_call_operand.hbm [shape: f32[16,128], index: 4, kind: output, shape index: {1}]  }
   0x1   :  { %12 = vsyncpa [#allocation3 + $0x1], 0 }
   0x2   :  { %13 = vsyncpa [#allocation6], 0 }
   0x3   :  { %14 = vsyncpa [#allocation4], 0 }
   0x4   :  { %16 = vsyncpa [#allocation4 + $0x1], 0 }
   0x5   :  { %17 = vsyncpa [#allocation10], 0 }
   0x6   :  { %19 = vsyncpa [#allocation10 + $0x1], 0  ;;  %s2808_s15 = smov 0   ;;  %s2810_s16 = smov 0  }
   0x7   :  { %s2812_s17 = smov 0   ;;  %s2814_s18 = smov 0  }
   0x8 LB: > { %s2829_s19 = sadd.s32 4294967295, %s2771_s18   ;;  %s2285_s20 = sadd.s32 4294967294, %s2771_s18   ;;  %s2771_s18 = sphi %s2814_s18, %s4468_s18   ;;  %s2767_s17 = sphi %s2812_s17, %s4467_s17   ;;  %s2763_s16 = sphi %s2810_s16, %s4466_s16   ;;  %s2759_s15 = sphi %s2808_s15, %s4465_s15  }
   0x9   : > { %p45_p0 = scmp.ne.s32.totalorder %s2763_s16, %s2759_s15  ;;  %p4162_p1 = scmp.eq.s32.totalorder %s2829_s19, 0 }
   0xa   : > { %p117_p3 = scmp.eq.s32.totalorder %s2285_s20, 1  ;;  %p2286_p5 = scmp.ge.s32.totalorder %s2771_s18, 1 }
   0xb   : > { %p2838_p4 = por %p4162_p1, %p45_p0  ;;  %p150_p7 = scmp.lt.s32.totalorder %s2771_s18, 3 }
   0xc   : > { %p2843_p6 = por %p117_p3, %p45_p0  ;;  %s2773_s24 = smov [#allocation5]  }
   0xd   : > { %s4295_s21 = scalar_select %p2838_p4, 1, 0 }
   0xe   : > { %s4296_s22 = scalar_select %p2843_p6, 1, 0 }
   0xf   : > { %p2848_p8 = pnand %p2286_p5, %p150_p7  ;;  %s162_s25 = sshll.u32 %s2773_s24, 4  ;;  %s163_s25 = int_to_ptr.vmem [resolvable:$true] %s162_s25 }
  0x10   : > { %s2774_s27 = smov [#allocation7]   ;;  %s2604_s29 = scalar_lea.vmem %s163_s25, 4096 }
  0x11   : > { %s4297_s23 = scalar_select %p2848_p8, 1, 0 }
  0x12   : > { %p2529_p9 = pneg %p2848_p8  ;;  %s175_s28 = sshll.u32 %s2774_s27, 4  ;;  %s176_s28 = int_to_ptr.vmem [resolvable:$true] %s175_s28 }
  0x13   : > { %p2605_p13 = scmp.ne.s32.totalorder %s163_s25, %s2604_s29  ;;  %p2612_p5 = scmp.lt.s32.totalorder %s163_s25, %s163_s25 }
  0x14   : > { %p2857_p11 = pnand %p2529_p9, %p4162_p1  ;;  %p2613_p7 = scmp.lt.s32.totalorder %s2604_s29, %s2604_s29 }
  0x16   : > { %p2595_p12 = pneg %p2857_p11  ;;  %p2614_p10 = por %p2613_p7, %p2612_p5 }
  0x18   : > { %p2607_p0 = pnand %p2605_p13, %p2595_p12 }
  0x1a   : > { %p2608_p3 = pneg %p2607_p0 }
  0x1c   : > { %p2615_p9 = pnand %p2614_p10, %p2608_p3 }
  0x1e   : > { %2618 = shalt.err (!%p2615_p9)
}
  0x1f   : > { %s2775_s30 = smov 256   ;;  %s2776_s5 = smov 16  }
  0x20   : > { %2532 = dma.hbm_to_vmem [thread:$0]  (!%p2857_p11), %s4158_s1, 4096, %s163_s25, [#allocation6], %s2775_s30, %s2775_s30, %s2776_s5  }
  0x21   : > { %s2630_s8 = scalar_lea.vmem %s176_s28, 4096  ;;  %p2638_p2 = scmp.lt.s32.totalorder %s176_s28, %s176_s28 }
  0x22   : > { %p2631_p1 = scmp.ne.s32.totalorder %s176_s28, %s2630_s8  ;;  %p2639_p6 = scmp.lt.s32.totalorder %s2630_s8, %s2630_s8 }
  0x24   : > { %p2633_p13 = pnand %p2631_p1, %p2595_p12  ;;  %p2640_p5 = por %p2639_p6, %p2638_p2 }
  0x26   : > { %p2634_p0 = pneg %p2633_p13 }
  0x28   : > { %p2641_p10 = pnand %p2640_p5, %p2634_p0 }
  0x2a   : > { %2644 = shalt.err (!%p2641_p10)
}
  0x2b   : > { %s2777_s9 = smov 128   ;;  %s2778_s10 = smov 8  }
  0x2c   : > { %2535 = dma.hbm_to_vmem [thread:$0]  (!%p2857_p11), %s4159_s2, 4096, %s176_s28, [#allocation6], %s2777_s9, %s2777_s9, %s2778_s10  }
  0x2d   : > { %s2880_s13 = sadd.s32 1, %s2771_s18   ;;  %s32_s20 = sadd.s32 1, %s2767_s17 }
  0x2e   : > { %s29_s14 = ssub.s32 %s2771_s18, %s2880_s13  ;;  %p39_p2 = scmp.ne.s32.totalorder %s2767_s17, %s2763_s16 }
  0x2f   : > { %p30_p1 = scmp.eq.s32.totalorder %s29_s14, 0  ;;  %p40_p6 = scmp.eq.s32.totalorder %s2771_s18, 0 }
  0x30   : > { %p4299_p3 = scmp.eq.s32.totalorder %s2829_s19, 1  ;;  %p2549_p9 = scmp.lt.s32.totalorder %s2771_s18, 2 }
  0x31   : > { %s2889_s24 = scalar_select %p30_p1, %s2767_s17, %s32_s20  }
  0x32   : > { %p41_p12 = por %p40_p6, %p39_p2  ;;  %p2893_p7 = por %p4299_p3, %p39_p2 }
  0x33   : > { %s189_s26 = sand.u32 1, %s2767_s17   ;;  %s2291_s28 = sshll.u32 %s2771_s18, 7 }
  0x34   : > { %s4300_s25 = scalar_select %p2893_p7, 1, 0 }
  0x35   : > { %s2290_s27 = sshll.u32 %s189_s26, 3  ;;  %s2903_s5 = scalar_lea.hbm %s4157_s0, %s2291_s28 }
  0x36   : > { %s193_s6 = scalar_lea.vmem [#allocation2], %s2290_s27  ;;  %p2905_p11 = pnand %p2549_p9, %p41_p12 }
  0x37   : > { %s200_s7 = sshll.u32 %s193_s6, 4  ;;  %s190_s9 = scalar_lea.sflag [#allocation3], %s189_s26  ;;  %s201_s7 = int_to_ptr.vmem [resolvable:$true] %s200_s7 }
  0x38   : > { %s2645_s10 = scalar_lea.hbm %s2903_s5, 128  ;;  %p2647_p0 = pneg %p2905_p11 }
  0x39   : > { %p2646_p13 = scmp.ne.s32.totalorder %s2903_s5, %s2645_s10  ;;  %s2650_s14 = scalar_lea.hbm %s4157_s0, 256 }
  0x3a   : > { %p2651_p1 = scmp.lt.s32.totalorder %s2903_s5, %s4157_s0  ;;  %p2652_p2 = scmp.lt.s32.totalorder %s2650_s14, %s2645_s10 }
  0x3b   : > { %p2648_p5 = pnand %p2647_p0, %p2646_p13 }
  0x3c   : > { %p2653_p6 = por %p2652_p2, %p2651_p1 }
  0x3d   : > { %p2649_p10 = pneg %p2648_p5 }
  0x3f   : > { %p2654_p12 = pnand %p2653_p6, %p2649_p10 }
  0x41   : > { %2657 = shalt.err (!%p2654_p12)
}
  0x42   : > { %s2658_s28 = scalar_lea.vmem %s201_s7, 128  ;;  %s2779_s26 = smov [#allocation2]  }
  0x43   : > { %p2659_p3 = scmp.ne.s32.totalorder %s201_s7, %s2658_s28  ;;  %s2663_s29 = sshll.u32 %s2779_s26, 4  ;;  %s2664_s29 = int_to_ptr.vmem [resolvable:$false] %s2663_s29 }
  0x44   : > { %s2665_s30 = scalar_lea.vmem %s2664_s29, 256  ;;  %p2666_p13 = scmp.lt.s32.totalorder %s201_s7, %s2664_s29 }
  0x45   : > { %p2661_p9 = pnand %p2659_p3, %p2647_p0  ;;  %p2667_p5 = scmp.lt.s32.totalorder %s2665_s30, %s2658_s28 }
  0x47   : > { %p2662_p7 = pneg %p2661_p9  ;;  %p2668_p4 = por %p2667_p5, %p2666_p13 }
  0x49   : > { %p2669_p8 = pnand %p2668_p4, %p2662_p7 }
  0x4b   : > { %2672 = shalt.err (!%p2669_p8)
}
  0x4c   : > { %2539 = dma.hbm_to_vmem [thread:$0]  (!%p2905_p11), %s2903_s5, 128, %s201_s7, %s190_s9  }
  0x4d   : > { %p4302_p10 = scmp.ne.s32.totalorder %s4297_s23, 0 }
  0x4f   : > { %209 = sbr.rel (%p4302_p10) target bundleno = 2578 (0xa12), region = 32 }
  0x54   : > { %s2926_s6 = sand.u32 1, %s2763_s16   ;;  %p4303_p4 = scmp.ne.s32.totalorder %s4295_s21, 0 }
  0x55   : > { %s2929_s10 = sshll.u32 %s2926_s6, 3  ;;  %s212_s11 = scalar_lea.sflag [#allocation3], %s2926_s6 }
  0x56   : > { %s215_s12 = scalar_lea.vmem [#allocation2], %s2929_s10 }
  0x57   : > { %2742 = dma.done.wait (%p4303_p4), %s212_s11, 128  }
  0x58   : > { %2744 = vsyncadd (%p4303_p4), %s212_s11, 4294967168  ;;  %p4304_p8 = scmp.eq.s32.totalorder %s2829_s19, 0 }
  0x5a   : > { %2746 = dma.done.wait (%p4304_p8), [#allocation6], 8192   ;;  %p4305_p7 = pmov %p4304_p8 }
  0x5b   : > { %v4180_v0 = vmov 0.0   ;;  %v285_v1 = vld [vmem:[#allocation5 + $0xf8] sm:$0xff]  ;;  %v284_v2 = vld [vmem:[#allocation5 + $0xf0] sm:$0xff]  ;;  %v283_v3 = vld [vmem:[#allocation5 + $0xe8] sm:$0xff]  ;;  %s2301_s21 = sshll.u32 %s2829_s19, 7  ;;  %s245_s23 = scalar_lea.vmem [#allocation8], %s2929_s10 }
  0x5c   : > { %2748 = vsyncadd (%p4305_p7), [#allocation6], 4294959104  ;;  %382 = vmatprep.mubr.f32.mxu0 %v4180_v0  ;;  %618 = vmatprep.mubr.f32.mxu1 %v4180_v0  ;;  %v2943_v4 = vand.u32 4294901760, %v285_v1  ;;  %v2945_v5 = vand.u32 4294901760, %v284_v2  ;;  %v2947_v6 = vand.u32 4294901760, %v283_v3  ;;  %v282_v7 = vld [vmem:[#allocation5 + $0xe0] sm:$0xff]  ;;  %s4082_s20 = scalar_lea.hbm %s4160_s3, %s2301_s21  ;;  %s4091_s28 = scalar_lea.hbm %s4161_s4, %s2301_s21 }
  0x5d   : > { %v281_v8 = vld [vmem:[#allocation5 + $0xd8] sm:$0xff]  ;;  %v280_v9 = vld [vmem:[#allocation5 + $0xd0] sm:$0xff]  ;;  %v2949_v10 = vand.u32 4294901760, %v282_v7  ;;  %v279_v13 = vld [vmem:[#allocation5 + $0xc8] sm:$0xff]  ;;  %s2151_s5 = sshll.u32 %s245_s23, 4  ;;  %s252_s7 = scalar_lea.vmem [#allocation9], %s2929_s10  ;;  %s4084_s5 = int_to_ptr.vmem [resolvable:$true] %s2151_s5 }
  0x5e   : > { %v2951_v11 = vand.u32 4294901760, %v281_v8  ;;  %v2953_v12 = vand.u32 4294901760, %v280_v9  ;;  %v278_v14 = vld [vmem:[#allocation5 + $0xc0] sm:$0xff]  ;;  %v277_v15 = vld [vmem:[#allocation5 + $0xb8] sm:$0xff]  ;;  %287 = vmatprep.subr.mxu0 %v2943_v4  ;;  %v2956_v16 = vand.u32 4294901760, %v279_v13  ;;  %v2963_v19 = vsub.f32 %v285_v1, %v2943_v4  ;;  %v2965_v20 = vld [vmem:[#allocation5 + $0xb0] sm:$0xff] }
  0x5f   : > { %v2958_v17 = vand.u32 4294901760, %v278_v14  ;;  %v2960_v18 = vand.u32 4294901760, %v277_v15  ;;  %v2967_v21 = vld [vmem:[#allocation5 + $0xa8] sm:$0xff]  ;;  %v2969_v22 = vld [vmem:[#allocation5 + $0xa0] sm:$0xff]  ;;  %289 = vmatpush1.msra.mxu0 %v2945_v5  ;;  %v2973_v23 = vand.u32 4294901760, %v2965_v20  ;;  %v2976_v24 = vsub.f32 %v284_v2, %v2945_v5  ;;  %v2984_v27 = vld [vmem:[#allocation5 + $0x98] sm:$0xff] }
  0x60   : > { %v2979_v25 = vand.u32 4294901760, %v2967_v21  ;;  %v2982_v26 = vsub.f32 %v283_v3, %v2947_v6  ;;  %v2986_v28 = vld [vmem:[#allocation5 + $0x90] sm:$0xff]  ;;  %v2988_v29 = vld [vmem:[#allocation5 + $0x88] sm:$0xff]  ;;  %291 = vmatprep.subr.mxu0 %v2947_v6  ;;  %v4178_v30 = vand.u32 4294901760, %v2963_v19  ;;  %v2993_v31 = vand.u32 4294901760, %v2969_v22  ;;  %v3010_v38 = vld [vmem:[#allocation5 + $0x80] sm:$0xff] }
  0x61   : > { %v2996_v32 = vsub.f32 %v282_v7, %v2949_v10  ;;  %v2999_v33 = vand.u32 4294901760, %v2984_v27  ;;  %293 = vmatpush1.msra.mxu0 %v2949_v10  ;;  %v4177_v34 = vand.u32 4294901760, %v2976_v24  ;;  %v3005_v36 = vsub.f32 %v281_v8, %v2951_v11  ;;  %v3034_v47 = vld [vmem:[#allocation5 + $0x78] sm:$0xff]  ;;  %v3044_v52 = vld [vmem:[#allocation5 + $0x70] sm:$0xff]  ;;  %v3051_v57 = vld [vmem:[#allocation5 + $0x68] sm:$0xff]  ;;  %s2164_s8 = sshll.u32 %s252_s7, 4  ;;  %s4093_s8 = int_to_ptr.vmem [resolvable:$true] %s2164_s8 }
  0x62   : > { %4306 = vst [vmem:[#allocation15_spill] sm:$0xff] %v2993_v31  ;;  %v4175_v35 = vand.u32 4294901760, %v2982_v26  ;;  %v3008_v37 = vand.u32 4294901760, %v2986_v28  ;;  %295 = vmatprep.subr.mxu0 %v2951_v11  ;;  %v397_v39 = vsub.f32 %v2963_v19, %v4178_v30  ;;  %v3018_v41 = vsub.f32 %v280_v9, %v2953_v12  ;;  %v3063_v62 = vld [vmem:[#allocation5 + $0x60] sm:$0xff]  ;;  %v3075_v7 = vld [vmem:[#allocation5 + $0x58] sm:$0xff]  ;;  %s2133_s26 = scalar_lea.sflag [#allocation4], %s2926_s6 }
  0x63   : > { %4307 = vst [vmem:[#allocation16_spill] sm:$0xff] %v2999_v33  ;;  %v4173_v40 = vand.u32 4294901760, %v2996_v32  ;;  %v3021_v42 = vand.u32 4294901760, %v2988_v29  ;;  %297 = vmatpush1.msra.mxu0 %v2953_v12  ;;  %v403_v43 = vsub.f32 %v2976_v24, %v4177_v34  ;;  %v4172_v45 = vand.u32 4294901760, %v3005_v36  ;;  %v3176_v34 = vld [vmem:[#allocation5 + $0x20] sm:$0xff]  ;;  %s2673_s29 = scalar_lea.vmem %s4084_s5, 128 }
  0x64   : > { %4308 = vst [vmem:[#allocation17_spill] sm:$0xff] %v3008_v37  ;;  %v409_v44 = vsub.f32 %v2982_v26, %v4175_v35  ;;  %v3032_v46 = vsub.f32 %v279_v13, %v2956_v16  ;;  %299 = vmatprep.subr.mxu0 %v2956_v16  ;;  %v398_v48 = vand.u32 4294901760, %v397_v39  ;;  %v4170_v50 = vand.u32 4294901760, %v3018_v41  ;;  %v3166_v35 = vld [vmem:[#allocation5 + $0x28] sm:$0xff]  ;;  %p2674_p11 = scmp.ne.s32.totalorder %s4084_s5, %s2673_s29  ;;  %p4462_p0 = scmp.ne.s32.totalorder %s4300_s25, 0 }
  0x65   : > { %4309 = vst [vmem:[#allocation18_spill] sm:$0xff] %v3021_v42  ;;  %v415_v49 = vsub.f32 %v2996_v32, %v4173_v40  ;;  %v3042_v51 = vand.u32 4294901760, %v3010_v38  ;;  %301 = vmatpush1.msra.mxu0 %v2958_v17  ;;  %v404_v53 = vand.u32 4294901760, %v403_v43  ;;  %v421_v55 = vsub.f32 %v3005_v36, %v4172_v45  ;;  %v3153_v45 = vld [vmem:[#allocation5 + $0x30] sm:$0xff]  ;;  %s2781_s30 = smov [#allocation8]  }
  0x66   : > { %v410_v54 = vand.u32 4294901760, %v409_v44  ;;  %v4168_v56 = vand.u32 4294901760, %v3032_v46  ;;  %303 = vmatprep.subr.mxu0 %v2960_v18  ;;  %399 = vmatprep.subr.mxu1 %v398_v48  ;;  %v427_v59 = vsub.f32 %v3018_v41, %v4170_v50  ;;  %v3058_v60 = vsub.f32 %v278_v14, %v2958_v17  ;;  %p2675_p1 = pnand %p2674_p11, %p4462_p0  ;;  %s2677_s11 = sshll.u32 %s2781_s30, 4  ;;  %s2678_s11 = int_to_ptr.vmem [resolvable:$false] %s2677_s11 }
  0x67   : > { %4310 = vst [vmem:[#allocation19_spill] sm:$0xff] %v3042_v51  ;;  %v416_v58 = vand.u32 4294901760, %v415_v49  ;;  %v3061_v61 = vand.u32 4294901760, %v3034_v47  ;;  %305 = vmatpush1.msra.mxu0 %v2973_v23  ;;  %405 = vmatpush1.msra.mxu1 %v404_v53  ;;  %v422_v63 = vand.u32 4294901760, %v421_v55  ;;  %v3070_v2 = vsub.f32 %v277_v15, %v2960_v18  ;;  %v3086_v15 = vld [vmem:[#allocation5 + $0x50] sm:$0xff]  ;;  %s2679_s9 = scalar_lea.vmem %s2678_s11, 256  ;;  %p2680_p6 = scmp.lt.s32.totalorder %s4084_s5, %s2678_s11 }
  0x68   : > { %v433_v1 = vsub.f32 %v3032_v46, %v4168_v56  ;;  %v3073_v3 = vand.u32 4294901760, %v3044_v52  ;;  %307 = vmatprep.subr.mxu0 %v2979_v25  ;;  %411 = vmatprep.subr.mxu1 %v410_v54  ;;  %v428_v8 = vand.u32 4294901760, %v427_v59  ;;  %v4167_v9 = vand.u32 4294901760, %v3058_v60  ;;  %p2676_p2 = pneg %p2675_p1  ;;  %p2681_p12 = scmp.lt.s32.totalorder %s2679_s9, %s2673_s29 }
  0x69   : > { %4311 = vst [vmem:[#allocation20_spill] sm:$0xff] %v3061_v61  ;;  %v3081_v13 = vsub.f32 %v2965_v20, %v2973_v23  ;;  %v3084_v14 = vand.u32 4294901760, %v3051_v57  ;;  %309 = vmatpush1.msra.mxu0 %v2993_v31  ;;  %417 = vmatpush1.msra.mxu1 %v416_v58  ;;  %v4166_v43 = vand.u32 4294901760, %v3070_v2  ;;  %v3092_v44 = vsub.f32 %v2967_v21, %v2979_v25  ;;  %v3109_v21 = vld [vmem:[#allocation5 + $0x48] sm:$0xff] }
  0x6a   : > { %4312 = vst [vmem:[#allocation21_spill] sm:$0xff] %v3073_v3  ;;  %v434_v39 = vand.u32 4294901760, %v433_v1  ;;  %v3095_v48 = vand.u32 4294901760, %v3063_v62  ;;  %311 = vmatprep.subr.mxu0 %v2999_v33  ;;  %423 = vmatprep.subr.mxu1 %v422_v63  ;;  %v439_v20 = vsub.f32 %v3058_v60, %v4167_v9  ;;  %v3104_v53 = vsub.f32 %v2969_v22, %v2993_v31  ;;  %v3132_v9 = vld [vmem:[#allocation5 + $0x40] sm:$0xff]  ;;  %p2682_p3 = por %p2681_p12, %p2680_p6 }
  0x6b   : > { %4313 = vst [vmem:[#allocation22_spill] sm:$0xff] %v3084_v14  ;;  %v4169_v49 = vand.u32 4294901760, %v3081_v13  ;;  %v3107_v54 = vand.u32 4294901760, %v3075_v7  ;;  %313 = vmatpush1.msra.mxu0 %v3008_v37  ;;  %429 = vmatpush1.msra.mxu1 %v428_v8  ;;  %v445_v55 = vsub.f32 %v3070_v2, %v4166_v43  ;;  %v4171_v58 = vand.u32 4294901760, %v3092_v44 }
  0x6c   : > { %4314 = vst [vmem:[#allocation23_spill] sm:$0xff] %v3095_v48  ;;  %v3118_v59 = vsub.f32 %v2984_v27, %v2999_v33  ;;  %v3121_v22 = vand.u32 4294901760, %v3086_v15  ;;  %315 = vmatprep.subr.mxu0 %v3021_v42  ;;  %435 = vmatprep.subr.mxu1 %v434_v39  ;;  %v440_v63 = vand.u32 4294901760, %v439_v20  ;;  %v4174_v8 = vand.u32 4294901760, %v3104_v53  ;;  %p2683_p9 = pnand %p2682_p3, %p2676_p2 }
  0x6d   : > { %4315 = vst [vmem:[#allocation24_spill] sm:$0xff] %v3107_v54  ;;  %v451_v1 = vsub.f32 %v3081_v13, %v4169_v49  ;;  %v3130_v43 = vsub.f32 %v2986_v28, %v3008_v37  ;;  %317 = vmatpush1.msra.mxu0 %v3042_v51  ;;  %v446_v27 = vand.u32 4294901760, %v445_v55  ;;  %v457_v39 = vsub.f32 %v3092_v44, %v4171_v58  ;;  %v3142_v49 = vld [vmem:[#allocation5 + $0x38] sm:$0xff] }
  0x6e   : > { %4316 = vst [vmem:[#allocation25_spill] sm:$0xff] %v3121_v22  ;;  %v4176_v20 = vand.u32 4294901760, %v3118_v59  ;;  %v3140_v56 = vand.u32 4294901760, %v3109_v21  ;;  %441 = vmatpush1.msra.mxu1 %v440_v63  ;;  %319 = vmatprep.subr.mxu0 %v3061_v61  ;;  %v463_v50 = vsub.f32 %v3104_v53, %v4174_v8  ;;  %v3151_v58 = vsub.f32 %v2988_v29, %v3021_v42 }
  0x6f   : > { %v452_v28 = vand.u32 4294901760, %v451_v1  ;;  %v4179_v55 = vand.u32 4294901760, %v3130_v43  ;;  %447 = vmatprep.subr.mxu1 %v446_v27  ;;  %321 = vmatpush1.msra.mxu0 %v3073_v3  ;;  %v458_v40 = vand.u32 4294901760, %v457_v39  ;;  %v3160_v1 = vand.u32 4294901760, %v3132_v9 }
  0x70   : > { %4317 = vst [vmem:[#allocation26_spill] sm:$0xff] %v3140_v56  ;;  %v469_v63 = vsub.f32 %v3118_v59, %v4176_v20  ;;  %v3164_v8 = vsub.f32 %v3010_v38, %v3042_v51  ;;  %323 = vmatprep.subr.mxu0 %v3084_v14  ;;  %v464_v29 = vand.u32 4294901760, %v463_v50  ;;  %v4184_v39 = vand.u32 4294901760, %v3151_v58 }
  0x71   : > { %4318 = vst [vmem:[#allocation27_spill] sm:$0xff] %v3160_v1  ;;  %453 = vmatpush1.msra.mxu1 %v452_v28  ;;  %v475_v27 = vsub.f32 %v3130_v43, %v4179_v55  ;;  %v3174_v20 = vand.u32 4294901760, %v3142_v49  ;;  %325 = vmatpush1.msra.mxu0 %v3095_v48  ;;  %v3182_v50 = vsub.f32 %v3034_v47, %v3061_v61  ;;  %v3185_v30 = vand.u32 4294901760, %v3153_v45  ;;  %v3187_v55 = vld [vmem:[#allocation5 + $0x18] sm:$0xff] }
  0x72   : > { %459 = vmatprep.subr.mxu1 %v458_v40  ;;  %v470_v38 = vand.u32 4294901760, %v469_v63  ;;  %v4187_v28 = vand.u32 4294901760, %v3164_v8  ;;  %327 = vmatprep.subr.mxu0 %v3107_v54  ;;  %v481_v40 = vsub.f32 %v3151_v58, %v4184_v39  ;;  %v3195_v63 = vsub.f32 %v3044_v52, %v3073_v3  ;;  %v3212_v52 = vld [vmem:[#allocation5 + $0x10] sm:$0xff] }
  0x73   : > { %4319 = vst [vmem:[#allocation28_spill] sm:$0xff] %v3185_v30  ;;  %465 = vmatpush1.msra.mxu1 %v464_v29  ;;  %v476_v0 = vand.u32 4294901760, %v475_v27  ;;  %v3198_v47 = vand.u32 4294901760, %v3166_v35  ;;  %329 = vmatpush1.msra.mxu0 %v3121_v22  ;;  %v3207_v61 = vsub.f32 %v3051_v57, %v3084_v14  ;;  %v3210_v39 = vand.u32 4294901760, %v3176_v34  ;;  %v3223_v57 = vld [vmem:[#allocation5 + $0x8] sm:$0xff] }
  0x74   : > { %471 = vmatprep.subr.mxu1 %v470_v38  ;;  %v487_v29 = vsub.f32 %v3164_v8, %v4187_v28  ;;  %331 = vmatprep.subr.mxu0 %v3140_v56  ;;  %v482_v38 = vand.u32 4294901760, %v481_v40  ;;  %v3218_v28 = vsub.f32 %v3063_v62, %v3095_v48  ;;  %v3221_v27 = vand.u32 4294901760, %v3187_v55  ;;  %v3246_v40 = vld [vmem:[#allocation5] sm:$0xff] }
  0x75   : > { %4320 = vst [vmem:[#allocation29_spill] sm:$0xff] %v3198_v47  ;;  %4321 = vst [vmem:[#allocation30_spill] sm:$0xff] %v3210_v39  ;;  %477 = vmatpush1.msra.mxu1 %v476_v0  ;;  %333 = vmatpush1.msra.mxu0 %v3160_v1  ;;  %v4322_v51 = vand.u32 4294901760, %v3182_v50  ;;  %v3232_v3 = vsub.f32 %v3075_v7, %v3107_v54  ;;  %v4323_v62 = vand.u32 4294901760, %v3195_v63  ;;  %v3240_v42 = vand.u32 4294901760, %v3212_v52 }
  0x76   : > { %v488_v14 = vand.u32 4294901760, %v487_v29  ;;  %483 = vmatprep.subr.mxu1 %v482_v38  ;;  %335 = vmatprep.subr.mxu0 %v3174_v20  ;;  %v4325_v38 = vand.u32 4294901760, %v3207_v61  ;;  %v3254_v29 = vand.u32 4294901760, %v3223_v57  ;;  %v3272_v31 = vand.u32 4294901760, %v3246_v40 }
  0x77   : > { %v493_v0 = vsub.f32 %v3182_v50, %v4322_v51  ;;  %v499_v48 = vsub.f32 %v3195_v63, %v4323_v62  ;;  %4324 = vst [vmem:[#allocation31_spill] sm:$0xff] %v3240_v42  ;;  %v3244_v51 = vsub.f32 %v3086_v15, %v3121_v22  ;;  %337 = vmatpush1.msra.mxu0 %v3185_v30  ;;  %v4326_v15 = vand.u32 4294901760, %v3218_v28 }
  0x78   : > { %489 = vmatpush1.msra.mxu1 %v488_v14  ;;  %v505_v62 = vsub.f32 %v3207_v61, %v4325_v38  ;;  %339 = vmatprep.subr.mxu0 %v3198_v47  ;;  %v253_v38 = vld [vmem:[%s215_s12] sm:$0xff] }
  0x79   : > { %v494_v7 = vand.u32 4294901760, %v493_v0  ;;  %v500_v37 = vand.u32 4294901760, %v499_v48  ;;  %v511_v22 = vsub.f32 %v3218_v28, %v4326_v15  ;;  %v4208_v14 = vand.u32 4294901760, %v3244_v51  ;;  %341 = vmatpush1.msra.mxu0 %v3210_v39 }
  0x7a   : > { %v3263_v0 = vsub.f32 %v3109_v21, %v3140_v56  ;;  %v506_v54 = vand.u32 4294901760, %v505_v62  ;;  %v4327_v48 = vand.u32 4294901760, %v3232_v3  ;;  %v3276_v15 = vsub.f32 %v3132_v9, %v3160_v1  ;;  %343 = vmatprep.subr.mxu0 %v3221_v27 }
  0x7b   : > { %495 = vmatprep.subr.mxu1 %v494_v7  ;;  %v512_v21 = vand.u32 4294901760, %v511_v22  ;;  %v523_v7 = vsub.f32 %v3244_v51, %v4208_v14  ;;  %345 = vmatpush1.msra.mxu0 %v3240_v42  ;;  %v3293_v22 = vsub.f32 %v3153_v45, %v3185_v30 }
  0x7c   : > { %v517_v33 = vsub.f32 %v3232_v3, %v4327_v48  ;;  %501 = vmatpush1.msra.mxu1 %v500_v37  ;;  %v4209_v62 = vand.u32 4294901760, %v3263_v0  ;;  %v3285_v48 = vsub.f32 %v3142_v49, %v3174_v20  ;;  %v4212_v9 = vand.u32 4294901760, %v3276_v15  ;;  %347 = vmatprep.subr.mxu0 %v3254_v29 }
  0x7d   : > { %507 = vmatprep.subr.mxu1 %v506_v54  ;;  %v3289_v37 = vand.u32 4294901760, %v253_v38  ;;  %v524_v14 = vand.u32 4294901760, %v523_v7  ;;  %v3302_v54 = vsub.f32 %v3166_v35, %v3198_v47  ;;  %349 = vmatpush1.msra.mxu0 %v3272_v31 }
  0x7e   : > { %v518_v56 = vand.u32 4294901760, %v517_v33  ;;  %513 = vmatpush1.msra.mxu1 %v512_v21  ;;  %v529_v49 = vsub.f32 %v3263_v0, %v4209_v62  ;;  %v535_v45 = vsub.f32 %v3276_v15, %v4212_v9  ;;  %v3314_v62 = vsub.f32 %v3176_v34, %v3210_v39  ;;  %628 = vmatprep.subr.mxu0 %v2963_v19 }
  0x7f   : > { %4328 = vst [vmem:[#allocation32_spill] sm:$0xff] %v3289_v37  ;;  %v3309_v21 = vsub.f32 %v253_v38, %v3289_v37  ;;  %v4329_v35 = vand.u32 4294901760, %v3285_v48  ;;  %v4217_v47 = vand.u32 4294901760, %v3302_v54  ;;  %v3323_v38 = vsub.f32 %v3187_v55, %v3221_v27 }
  0x80   : > { %519 = vmatprep.subr.mxu1 %v518_v56  ;;  %v530_v33 = vand.u32 4294901760, %v529_v49  ;;  %v536_v9 = vand.u32 4294901760, %v535_v45  ;;  %v4330_v34 = vand.u32 4294901760, %v3293_v22  ;;  %v4221_v49 = vand.u32 4294901760, %v3314_v62 }
  0x81   : > { %525 = vmatpush1.msra.mxu1 %v524_v14  ;;  %v541_v56 = vsub.f32 %v3285_v48, %v4329_v35  ;;  %v4218_v7 = vand.u32 4294901760, %v3309_v21  ;;  %v553_v35 = vsub.f32 %v3302_v54, %v4217_v47  ;;  %v4225_v30 = vand.u32 4294901760, %v3323_v38 }
  0x82   : > { %v547_v14 = vsub.f32 %v3293_v22, %v4330_v34  ;;  %531 = vmatprep.subr.mxu1 %v530_v33  ;;  %v3336_v55 = vsub.f32 %v3212_v52, %v3240_v42  ;;  %v559_v33 = vsub.f32 %v3314_v62, %v4221_v49 }
  0x83   : > { %v542_v39 = vand.u32 4294901760, %v541_v56  ;;  %537 = vmatpush1.msra.mxu1 %v536_v9  ;;  %v386_v45 = vsub.f32 %v3309_v21, %v4218_v7  ;;  %v3346_v56 = vsub.f32 %v3223_v57, %v3254_v29  ;;  %v554_v47 = vand.u32 4294901760, %v553_v35 }
  0x84   : > { %4331 = vst [vmem:[#allocation33_spill] sm:$0xff] %v3336_v55  ;;  %v548_v34 = vand.u32 4294901760, %v547_v14  ;;  %v565_v52 = vsub.f32 %v3323_v38, %v4225_v30  ;;  %v4224_v9 = vand.u32 4294901760, %v3336_v55  ;;  %v3354_v7 = vsub.f32 %v3246_v40, %v3272_v31 }
  0x85   : > { %543 = vmatprep.subr.mxu1 %v542_v39  ;;  %v387_v14 = vand.u32 4294901760, %v386_v45  ;;  %v560_v42 = vand.u32 4294901760, %v559_v33  ;;  %v4223_v49 = vand.u32 4294901760, %v3346_v56  ;;  %v4333_v33 = vmov 0.0  }
  0x86   : > { %4332 = vst [vmem:[#allocation34_spill] sm:$0xff] %v3354_v7  ;;  %549 = vmatpush1.msra.mxu1 %v548_v34  ;;  %v566_v57 = vand.u32 4294901760, %v565_v52  ;;  %v571_v39 = vsub.f32 %v3336_v55, %v4224_v9  ;;  %v4222_v35 = vand.u32 4294901760, %v3354_v7  ;;  %v4334_v52 = vld [vmem:[#allocation15_spill] sm:$0xff]  ;;  %v4345_v9 = vld [vmem:[#allocation26_spill] sm:$0xff]  ;;  %v4346_v30 = vand.u32 4294901760, %v2963_v19 }
  0x87   : > { %555 = vmatprep.subr.mxu1 %v554_v47  ;;  %388 = vmatmul.mubr.f32.vlgmr.msra.gmra.mxu0 %v387_v14  ;;  %v577_v40 = vsub.f32 %v3346_v56, %v4223_v49  ;;  %v4335_v14 = vld [vmem:[#allocation16_spill] sm:$0xff]  ;;  %v4344_v49 = vld [vmem:[#allocation25_spill] sm:$0xff]  ;;  %v4353_v19 = vand.u32 4294901760, %v3005_v36 }
  0x88   : > { %561 = vmatpush1.msra.mxu1 %v560_v42  ;;  %631 = vmatpush1.msra.mxu0 %v2976_v24  ;;  %v572_v45 = vand.u32 4294901760, %v571_v39  ;;  %v583_v47 = vsub.f32 %v3354_v7, %v4222_v35  ;;  %v4337_v39 = vld [vmem:[#allocation18_spill] sm:$0xff]  ;;  %v4343_v35 = vld [vmem:[#allocation24_spill] sm:$0xff] }
  0x89   : > { %567 = vmatprep.subr.mxu1 %v566_v57  ;;  %634 = vmatprep.subr.mxu0 %v2982_v26  ;;  %v578_v34 = vand.u32 4294901760, %v577_v40  ;;  %v4336_v57 = vld [vmem:[#allocation17_spill] sm:$0xff]  ;;  %v4338_v40 = vld [vmem:[#allocation19_spill] sm:$0xff] }
  0x8a   : > { %754 = vmatprep.mubr.f32.mxu0 %v4333_v33  ;;  %637 = vmatpush1.msra.mxu0 %v2996_v32  ;;  %v584_v42 = vand.u32 4294901760, %v583_v47  ;;  %v4340_v47 = vld [vmem:[#allocation21_spill] sm:$0xff] }
  0x8b   : > { %573 = vmatpush1.msra.mxu1 %v572_v45  ;;  %640 = vmatprep.subr.mxu0 %v3005_v36  ;;  %v4339_v45 = vld [vmem:[#allocation20_spill] sm:$0xff]  ;;  %v4358_v36 = vand.u32 4294901760, %v3309_v21 }
  0x8c   : > { %579 = vmatprep.subr.mxu1 %v578_v34  ;;  %643 = vmatpush1.msra.mxu0 %v3018_v41  ;;  %v4341_v34 = vld [vmem:[#allocation22_spill] sm:$0xff] }
  0x8d   : > { %585 = vmatpush1.msra.mxu1 %v584_v42  ;;  %646 = vmatprep.subr.mxu0 %v3032_v46  ;;  %v4342_v42 = vld [vmem:[#allocation23_spill] sm:$0xff] }
  0x8e   : > { %620 = vmatmul.mubr.f32.vlgmr.msra.gmra.mxu1 %v3289_v37  ;;  %649 = vmatpush1.msra.mxu0 %v3058_v60  ;;  %v4347_v37 = vld [vmem:[#allocation28_spill] sm:$0xff] }
  0x8f   : > { %764 = vmatprep.subr.mxu1 %v2943_v4  ;;  %652 = vmatprep.subr.mxu0 %v3070_v2 }
  0x90   : > { %766 = vmatpush1.msra.mxu1 %v2945_v5  ;;  %655 = vmatpush1.msra.mxu0 %v3081_v13 }
  0x91   : > { %768 = vmatprep.subr.mxu1 %v2947_v6  ;;  %658 = vmatprep.subr.mxu0 %v3092_v44 }
  0x92   : > { %770 = vmatpush1.msra.mxu1 %v2949_v10  ;;  %661 = vmatpush1.msra.mxu0 %v3104_v53 }
  0x93   : > { %772 = vmatprep.subr.mxu1 %v2951_v11  ;;  %664 = vmatprep.subr.mxu0 %v3118_v59 }
  0x94   : > { %774 = vmatpush1.msra.mxu1 %v2953_v12  ;;  %667 = vmatpush1.msra.mxu0 %v3130_v43 }
  0x95   : > { %776 = vmatprep.subr.mxu1 %v2956_v16  ;;  %670 = vmatprep.subr.mxu0 %v3151_v58 }
  0x96   : > { %778 = vmatpush1.msra.mxu1 %v2958_v17  ;;  %673 = vmatpush1.msra.mxu0 %v3164_v8 }
  0x97   : > { %780 = vmatprep.subr.mxu1 %v2960_v18  ;;  %676 = vmatprep.subr.mxu0 %v3182_v50 }
  0x98   : > { %782 = vmatpush1.msra.mxu1 %v2973_v23  ;;  %679 = vmatpush1.msra.mxu0 %v3195_v63 }
  0x99   : > { %784 = vmatprep.subr.mxu1 %v2979_v25  ;;  %682 = vmatprep.subr.mxu0 %v3207_v61 }
  0x9a   : > { %786 = vmatpush1.msra.mxu1 %v4334_v52  ;;  %685 = vmatpush1.msra.mxu0 %v3218_v28 }
  0x9b   : > { %788 = vmatprep.subr.mxu1 %v4335_v14  ;;  %688 = vmatprep.subr.mxu0 %v3232_v3 }
  0x9c   : > { %790 = vmatpush1.msra.mxu1 %v4336_v57  ;;  %691 = vmatpush1.msra.mxu0 %v3244_v51 }
  0x9d   : > { %792 = vmatprep.subr.mxu1 %v4337_v39  ;;  %694 = vmatprep.subr.mxu0 %v3263_v0 }
  0x9e   : > { %794 = vmatpush1.msra.mxu1 %v4338_v40  ;;  %697 = vmatpush1.msra.mxu0 %v3276_v15 }
  0x9f   : > { %796 = vmatprep.subr.mxu1 %v4339_v45  ;;  %700 = vmatprep.subr.mxu0 %v3285_v48 }
  0xa0   : > { %798 = vmatpush1.msra.mxu1 %v4340_v47  ;;  %703 = vmatpush1.msra.mxu0 %v3293_v22 }
  0xa1   : > { %800 = vmatprep.subr.mxu1 %v4341_v34  ;;  %706 = vmatprep.subr.mxu0 %v3302_v54 }
  0xa2   : > { %802 = vmatpush1.msra.mxu1 %v4342_v42  ;;  %709 = vmatpush1.msra.mxu0 %v3314_v62 }
  0xa3   : > { %804 = vmatprep.subr.mxu1 %v4343_v35  ;;  %712 = vmatprep.subr.mxu0 %v3323_v38 }
  0xa4   : > { %806 = vmatpush1.msra.mxu1 %v4344_v49  ;;  %715 = vmatpush1.msra.mxu0 %v3336_v55  ;;  %v4348_v49 = vand.u32 4294901760, %v2976_v24  ;;  %v4349_v55 = vld [vmem:[#allocation29_spill] sm:$0xff]  ;;  %v4355_v24 = vand.u32 4294901760, %v3018_v41  ;;  %v4360_v41 = vand.u32 4294901760, %v3081_v13  ;;  %v4377_v13 = vand.u32 4294901760, %v3302_v54 }
  0xa5   : > { %808 = vmatprep.subr.mxu1 %v4345_v9  ;;  %718 = vmatprep.subr.mxu0 %v3346_v56  ;;  %v4350_v9 = vand.u32 4294901760, %v2982_v26  ;;  %v4356_v26 = vand.u32 4294901760, %v3032_v46  ;;  %v4361_v46 = vand.u32 4294901760, %v3092_v44  ;;  %v4379_v44 = vand.u32 4294901760, %v3323_v38 }
  0xa6   : > { %810 = vmatpush1.msra.mxu1 %v3160_v1  ;;  %721 = vmatpush1.msra.mxu0 %v3354_v7  ;;  %v4351_v1 = vld [vmem:[#allocation30_spill] sm:$0xff]  ;;  %v4352_v7 = vand.u32 4294901760, %v2996_v32  ;;  %v4357_v32 = vand.u32 4294901760, %v3058_v60  ;;  %v4362_v60 = vand.u32 4294901760, %v3104_v53  ;;  %v4380_v53 = vld [vmem:[#allocation33_spill] sm:$0xff] }
  0xa7   : > { %812 = vmatprep.subr.mxu1 %v3174_v20  ;;  %757 = vmatmul.mubr.f32.vlgmr.msra.gmra.mxu0 %v3309_v21 }
  0xa8   : > { %872 = vmatprep.subr.mxu0 %v4346_v30  ;;  %814 = vmatpush1.msra.mxu1 %v4347_v37  ;;  %v4354_v30 = vld [vmem:[#allocation31_spill] sm:$0xff] }
  0xa9   : > { %876 = vmatpush1.msra.mxu0 %v4348_v49  ;;  %816 = vmatprep.subr.mxu1 %v4349_v55 }
  0xaa   : > { %880 = vmatprep.subr.mxu0 %v4350_v9  ;;  %818 = vmatpush1.msra.mxu1 %v4351_v1 }
  0xab   : > { %884 = vmatpush1.msra.mxu0 %v4352_v7  ;;  %820 = vmatprep.subr.mxu1 %v3221_v27  ;;  %v4359_v7 = vand.u32 4294901760, %v3070_v2  ;;  %v4363_v2 = vand.u32 4294901760, %v3118_v59  ;;  %v4382_v59 = vld [vmem:[#allocation25_spill] sm:$0xff] }
  0xac   : > { %888 = vmatprep.subr.mxu0 %v4353_v19  ;;  %822 = vmatpush1.msra.mxu1 %v4354_v30 }
  0xad   : > { %892 = vmatpush1.msra.mxu0 %v4355_v24  ;;  %824 = vmatprep.subr.mxu1 %v3254_v29 }
  0xae   : > { %896 = vmatprep.subr.mxu0 %v4356_v26  ;;  %826 = vmatpush1.msra.mxu1 %v3272_v31 }
  0xaf   : > { %859 = vmatprep.mubr.f32.mxu1 %v4333_v33  ;;  %900 = vmatpush1.msra.mxu0 %v4357_v32 }
  0xb0   : > { %863 = vmatmul.mubr.f32.vlgmr.msra.gmra.mxu1 %v4358_v36  ;;  %904 = vmatprep.subr.mxu0 %v4359_v7 }
  0xb1   : > { %1038 = vmatprep.subr.mxu1 %v2943_v4  ;;  %908 = vmatpush1.msra.mxu0 %v4360_v41  ;;  %v4364_v4 = vand.u32 4294901760, %v3130_v43  ;;  %v4378_v43 = vand.u32 4294901760, %v3314_v62 }
  0xb2   : > { %1040 = vmatpush1.msra.mxu1 %v2945_v5  ;;  %912 = vmatprep.subr.mxu0 %v4361_v46  ;;  %v4365_v5 = vand.u32 4294901760, %v3151_v58  ;;  %v4381_v58 = vand.u32 4294901760, %v4380_v53 }
  0xb3   : > { %1042 = vmatprep.subr.mxu1 %v2947_v6  ;;  %916 = vmatpush1.msra.mxu0 %v4362_v60  ;;  %v4366_v6 = vand.u32 4294901760, %v3164_v8  ;;  %v4383_v8 = vand.u32 4294901760, %v3346_v56 }
  0xb4   : > { %1044 = vmatpush1.msra.mxu1 %v2949_v10  ;;  %920 = vmatprep.subr.mxu0 %v4363_v2  ;;  %v4367_v10 = vand.u32 4294901760, %v3182_v50  ;;  %v4385_v50 = vld [vmem:[#allocation34_spill] sm:$0xff] }
  0xb5   : > { %1046 = vmatprep.subr.mxu1 %v2951_v11  ;;  %924 = vmatpush1.msra.mxu0 %v4364_v4  ;;  %v4368_v11 = vand.u32 4294901760, %v3195_v63  ;;  %v4386_v63 = vand.u32 4294901760, %v4385_v50 }
  0xb6   : > { %1048 = vmatpush1.msra.mxu1 %v2953_v12  ;;  %928 = vmatprep.subr.mxu0 %v4365_v5  ;;  %v4369_v12 = vand.u32 4294901760, %v3207_v61  ;;  %v4375_v61 = vand.u32 4294901760, %v3285_v48 }
  0xb7   : > { %1050 = vmatprep.subr.mxu1 %v2956_v16  ;;  %932 = vmatpush1.msra.mxu0 %v4366_v6  ;;  %v4370_v16 = vand.u32 4294901760, %v3218_v28  ;;  %v4384_v28 = vld [vmem:[#allocation26_spill] sm:$0xff] }
  0xb8   : > { %1052 = vmatpush1.msra.mxu1 %v2958_v17  ;;  %936 = vmatprep.subr.mxu0 %v4367_v10  ;;  %v4371_v17 = vand.u32 4294901760, %v3232_v3  ;;  %v4376_v3 = vand.u32 4294901760, %v3293_v22 }
  0xb9   : > { %1054 = vmatprep.subr.mxu1 %v2960_v18  ;;  %940 = vmatpush1.msra.mxu0 %v4368_v11  ;;  %v4372_v18 = vand.u32 4294901760, %v3244_v51  ;;  %v4387_v51 = vld [vmem:[#allocation27_spill] sm:$0xff] }
  0xba   : > { %1056 = vmatpush1.msra.mxu1 %v2973_v23  ;;  %944 = vmatprep.subr.mxu0 %v4369_v12  ;;  %v4373_v23 = vand.u32 4294901760, %v3263_v0  ;;  %v4388_v0 = vld [vmem:[#allocation32_spill] sm:$0xff] }
  0xbb   : > { %1058 = vmatprep.subr.mxu1 %v2979_v25  ;;  %948 = vmatpush1.msra.mxu0 %v4370_v16  ;;  %v4374_v25 = vand.u32 4294901760, %v3276_v15 }
  0xbc   : > { %1060 = vmatpush1.msra.mxu1 %v4334_v52  ;;  %952 = vmatprep.subr.mxu0 %v4371_v17 }
  0xbd   : > { %1062 = vmatprep.subr.mxu1 %v4335_v14  ;;  %956 = vmatpush1.msra.mxu0 %v4372_v18 }
  0xbe   : > { %1064 = vmatpush1.msra.mxu1 %v4336_v57  ;;  %960 = vmatprep.subr.mxu0 %v4373_v23 }
  0xbf   : > { %1066 = vmatprep.subr.mxu1 %v4337_v39  ;;  %964 = vmatpush1.msra.mxu0 %v4374_v25 }
  0xc0   : > { %1068 = vmatpush1.msra.mxu1 %v4338_v40  ;;  %968 = vmatprep.subr.mxu0 %v4375_v61 }
  0xc1   : > { %1070 = vmatprep.subr.mxu1 %v4339_v45  ;;  %972 = vmatpush1.msra.mxu0 %v4376_v3 }
  0xc2   : > { %1072 = vmatpush1.msra.mxu1 %v4340_v47  ;;  %976 = vmatprep.subr.mxu0 %v4377_v13 }
  0xc3   : > { %1074 = vmatprep.subr.mxu1 %v4341_v34  ;;  %980 = vmatpush1.msra.mxu0 %v4378_v43 }
  0xc4   : > { %1076 = vmatpush1.msra.mxu1 %v4342_v42  ;;  %984 = vmatprep.subr.mxu0 %v4379_v44 }
  0xc5   : > { %1078 = vmatprep.subr.mxu1 %v4343_v35  ;;  %988 = vmatpush1.msra.mxu0 %v4381_v58 }
  0xc6   : > { %1080 = vmatpush1.msra.mxu1 %v4382_v59  ;;  %992 = vmatprep.subr.mxu0 %v4383_v8 }
  0xc7   : > { %1082 = vmatprep.subr.mxu1 %v4384_v28  ;;  %996 = vmatpush1.msra.mxu0 %v4386_v63 }
  0xc8   : > { %1029 = vmatprep.mubr.f32.mxu0 %v4333_v33  ;;  %1084 = vmatpush1.msra.mxu1 %v4387_v51 }
  0xc9   : > { %1031 = vmatmul.mubr.f32.vlgmr.msra.gmra.mxu0 %v4388_v0  ;;  %1086 = vmatprep.subr.mxu1 %v3174_v20 }
  0xca   : > { %1133 = vmatprep.mubr.f32.mxu1 %v4333_v33  ;;  %1088 = vmatpush1.msra.mxu1 %v4347_v37 }
  0xcb   : > { %1090 = vmatprep.subr.mxu1 %v4349_v55 }
  0xcc   : > { %1092 = vmatpush1.msra.mxu1 %v4351_v1 }
  0xcd   : > { %1094 = vmatprep.subr.mxu1 %v3221_v27 }
  0xce   : > { %1096 = vmatpush1.msra.mxu1 %v4354_v30 }
  0xcf   : > { %1098 = vmatprep.subr.mxu1 %v3254_v29  ;;  %v1144_v29 = vlaneseq }
  0xd0   : > { %1100 = vmatpush1.msra.mxu1 %v3272_v31 }
  0xd1   : > { %1135 = vmatmul.mubr.f32.vlgmr.msra.gmra.mxu1 %v4388_v0  ;;  %v3538_v40 = vand.u32 127, %v1144_v29  ;;  %v1266_v29 = vld [vmem:[#allocation7 + $0xf8] sm:$0xff] }
  0xd3   : > { %vm1146_vm0 = vcmp.eq.s32.totalorder %v3538_v40, 0 }
 0x147   : > { %v389_v15 = vpop.f32.mrf.mxu0 }
 0x149   : > { %v391_v20 = vpop.f32.mrf.mxu0 }
 0x14e   : > { %v621_v62 = vpop.f32.mrf.mxu1 }
 0x14f   : > { %v622_v21 = vadd.f32 %v621_v62, %v389_v15 }
 0x150   : > { %v623_v22 = vpop.f32.mrf.mxu1 }
 0x151   : > { %v624_v1 = vadd.f32 %v623_v22, %v391_v20 }
 0x167   : > { %v758_v48 = vpop.f32.mrf.mxu0 }
 0x168   : > { %v759_v49 = vadd.f32 %v758_v48, %v622_v21 }
 0x169   : > { %v760_v37 = vpop.f32.mrf.mxu0 }
 0x16a   : > { %v761_v55 = vadd.f32 %v760_v37, %v624_v1 }
 0x170   : > { %v864_v54 = vpop.f32.mrf.mxu1 }
 0x171   : > { %v865_v56 = vadd.f32 %v864_v54, %v759_v49 }
 0x172   : > { %v866_v27 = vpop.f32.mrf.mxu1 }
 0x173   : > { %v867_v35 = vadd.f32 %v866_v27, %v761_v55 }
 0x189   : > { %v1032_v38 = vpop.f32.mrf.mxu0 }
 0x18a   : > { %v1033_v31 = vadd.f32 %v1032_v38, %v865_v56 }
 0x18b   : > { %v1034_v9 = vpop.f32.mrf.mxu0 }
 0x18c   : > { %v1035_v14 = vadd.f32 %v1034_v9, %v867_v35  ;;  %v1250_v35 = vld [vmem:[#allocation7 + $0x78] sm:$0xff] }
 0x191   : > { %v1136_v52 = vpop.f32.mrf.mxu1 }
 0x192   : > { %v3536_v57 = vadd.f32 %v1136_v52, %v1033_v31  ;;  %v1265_v31 = vld [vmem:[#allocation7 + $0xf0] sm:$0xff]  ;;  %v3566_v52 = vand.u32 4294901760, %v1266_v29 }
 0x193   : > { %v1138_v39 = vpop.f32.mrf.mxu1 }
 0x194   : > { %v3540_v45 = vadd.f32 %v1138_v39, %v1035_v14  ;;  %v1141_v47 = vmul.f32 %v3536_v57, %v3536_v57  ;;  %v3568_v14 = vand.u32 4294901760, %v1250_v35  ;;  %v3570_v39 = vand.u32 4294901760, %v1265_v31  ;;  %2305 = vmatprep.subr.mxu0 %v3566_v52 }
 0x196   : > { %v1142_v34 = vmul.f32 %v3540_v45, %v3540_v45  ;;  %2306 = vmatpush3.msra.mxu0 %v3568_v14 }
 0x197   : > { %2307 = vmatprep.subr.mxu0 %v3570_v39 }
 0x198   : > { %v1143_v42 = vadd.f32 %v1142_v34, %v1141_v47  ;;  %v1249_v47 = vld [vmem:[#allocation7 + $0x70] sm:$0xff]  ;;  %v1264_v34 = vld [vmem:[#allocation7 + $0xe8] sm:$0xff] }
 0x19a   : > { %v3547_v19 = vsel %vm1146_vm0, 0.0, %v1143_v42  ;;  %v1248_v42 = vld [vmem:[#allocation7 + $0x68] sm:$0xff] }
 0x19b   : > { %1148 = vmax.xlane.f32.xlu0 %v3547_v19 }
 0x224   : > { %v1149_v30 = vpop.xlane.xlu0 %1148 }
 0x225   : > { %vm1150_vm1 = vcmp.ge.f32.partialorder %v3547_v19, %v1149_v30  ;;  %v3572_v30 = vand.u32 4294901760, %v1249_v47 }
 0x226   : > { %v1151_v24 = vsel %vm1150_vm1, %v3538_v40, 128 }
 0x227   : > { %v1153_v26 = vshra.s32 %v1151_v24, 16  ;;  %v1152_v36 = vand.u32 65535, %v1151_v24  ;;  %v3574_v24 = vand.u32 4294901760, %v1264_v34  ;;  %2308 = vmatpush3.msra.mxu0 %v3572_v30 }
 0x229   : > { %v1155_v32 = vcvt.s32.f32 %v1153_v26  ;;  %v1154_v41 = vcvt.s32.f32 %v1152_v36  ;;  %v3576_v26 = vand.u32 4294901760, %v1248_v42  ;;  %v1247_v36 = vld [vmem:[#allocation7 + $0x60] sm:$0xff]  ;;  %2309 = vmatprep.subr.mxu0 %v3574_v24 }
 0x22b   : > { %1156 = vmin.xlane.f32.xlu0 %v1155_v32  ;;  %2310 = vmatpush3.msra.mxu0 %v3576_v26 }
 0x2b4   : > { %v1157_v7 = vpop.xlane.xlu0 %1156 }
 0x2b5   : > { %vm1158_vm2 = vcmp.eq.f32.partialorder %v1155_v32, %v1157_v7  ;;  %v1163_v60 = vcvt.f32.s32 %v1157_v7  ;;  %v1263_v32 = vld [vmem:[#allocation7 + $0xe0] sm:$0xff]  ;;  %v3579_v7 = vsub.f32 %v1266_v29, %v3566_v52 }
 0x2b6   : > { %v1159_v46 = vsel %vm1158_vm2, %v1154_v41, inf  ;;  %v3582_v41 = vsub.f32 %v1250_v35, %v3568_v14  ;;  %v1243_v29 = vld [vmem:[#allocation7 + $0x40] sm:$0xff] }
 0x2b7   : > { %1160 = vmin.xlane.f32.xlu1 %v1159_v46  ;;  %v1164_v4 = vshll.u32 %v1163_v60, 16  ;;  %4389 = vst [vmem:[#allocation15_spill] sm:$0xff] %v3579_v7  ;;  %v3585_v46 = vsub.f32 %v1265_v31, %v3570_v39  ;;  %v3587_v60 = vand.u32 4294901760, %v1263_v32 }
 0x2b9   : > { %2311 = vmatprep.subr.mxu0 %v3587_v60 }
 0x340   : > { %v1161_v2 = vpop.xlane.xlu1 %1160 }
 0x341   : > { %v1162_v5 = vcvt.f32.s32 %v1161_v2  ;;  %v3591_v2 = vsub.f32 %v1249_v47, %v3572_v30 }
 0x343   : > { %v1165_v6 = vadd.s32 %v1164_v4, %v1162_v5  ;;  %v3594_v4 = vsub.f32 %v1264_v34, %v3574_v24  ;;  %v3597_v5 = vsub.f32 %v1248_v42, %v3576_v26 }
 0x345   : > { %vm1166_vm3 = vcmp.eq.s32.totalorder %v3538_v40, %v1165_v6  ;;  %v3599_v6 = vand.u32 4294901760, %v1247_v36 }
 0x346   : > { %v1167_v10 = vsel %vm1166_vm3, -inf, %v3547_v19 }
 0x347   : > { %1168 = vmax.xlane.f32.xlu1 %v1167_v10  ;;  %2312 = vmatpush3.msra.mxu0 %v3599_v6 }
 0x3d0   : > { %v1169_v11 = vpop.xlane.xlu1 %1168 }
 0x3d1   : > { %vm1170_vm4 = vcmp.ge.f32.partialorder %v1167_v10, %v1169_v11  ;;  %v4244_v11 = vand.u32 4294901760, %v3582_v41 }
 0x3d2   : > { %v1171_v12 = vsel %vm1170_vm4, %v3538_v40, 128 }
 0x3d3   : > { %v1173_v16 = vshra.s32 %v1171_v12, 16  ;;  %v1172_v18 = vand.u32 65535, %v1171_v12  ;;  %v4242_v12 = vand.u32 4294901760, %v3585_v46 }
 0x3d5   : > { %v1175_v17 = vcvt.s32.f32 %v1173_v16  ;;  %v1174_v25 = vcvt.s32.f32 %v1172_v18  ;;  %v3606_v16 = vsub.f32 %v1263_v32, %v3587_v60  ;;  %v4240_v18 = vand.u32 4294901760, %v3594_v4 }
 0x3d7   : > { %1176 = vmin.xlane.f32.xlu0 %v1175_v17 }
 0x460   : > { %v1177_v23 = vpop.xlane.xlu0 %1176 }
 0x461   : > { %vm1178_vm5 = vcmp.eq.f32.partialorder %v1175_v17, %v1177_v23  ;;  %v1183_v3 = vcvt.f32.s32 %v1177_v23  ;;  %v4241_v17 = vand.u32 4294901760, %v3591_v2  ;;  %v4239_v23 = vand.u32 4294901760, %v3597_v5 }
 0x462   : > { %v1179_v61 = vsel %vm1178_vm5, %v1174_v25, inf  ;;  %v3613_v25 = vsub.f32 %v1247_v36, %v3599_v6 }
 0x463   : > { %1180 = vmin.xlane.f32.xlu1 %v1179_v61  ;;  %v1184_v43 = vshll.u32 %v1183_v3, 16  ;;  %v1383_v3 = vsub.f32 %v3582_v41, %v4244_v11  ;;  %v1239_v11 = vld [vmem:[#allocation7 + $0x20] sm:$0xff] }
 0x4ec   : > { %v1181_v13 = vpop.xlane.xlu1 %1180 }
 0x4ed   : > { %v1182_v44 = vcvt.f32.s32 %v1181_v13  ;;  %v1502_v13 = vsub.f32 %v3585_v46, %v4242_v12  ;;  %v1255_v12 = vld [vmem:[#allocation7 + $0xa0] sm:$0xff] }
 0x4ef   : > { %v1185_v53 = vadd.s32 %v1184_v43, %v1182_v44  ;;  %v4237_v43 = vand.u32 4294901760, %v3606_v16  ;;  %v1390_v44 = vsub.f32 %v3591_v2, %v4241_v17 }
 0x4f1   : > { %vm1186_vm6 = vcmp.eq.s32.totalorder %v3538_v40, %v1185_v53  ;;  %v1509_v53 = vsub.f32 %v3594_v4, %v4240_v18 }
 0x4f2   : > { %v1187_v58 = vsel %vm1186_vm6, -inf, %v1167_v10  ;;  %v4245_v10 = vand.u32 4294901760, %v3579_v7 }
 0x4f3   : > { %1188 = vmax.xlane.f32.xlu0 %v1187_v58 }
 0x4f4   : > { %v1495_v61 = vsub.f32 %v3579_v7, %v4245_v10 }
 0x57c   : > { %v1189_v59 = vpop.xlane.xlu0 %1188 }
 0x57d   : > { %vm1190_vm7 = vcmp.ge.f32.partialorder %v1187_v58, %v1189_v59  ;;  %v4235_v59 = vand.u32 4294901760, %v3613_v25 }
 0x57e   : > { %v1191_v8 = vsel %vm1190_vm7, %v3538_v40, 128 }
 0x57f   : > { %v1193_v28 = vshra.s32 %v1191_v8, 16  ;;  %v1192_v63 = vand.u32 65535, %v1191_v8  ;;  %v1262_v8 = vld [vmem:[#allocation7 + $0xd8] sm:$0xff] }
 0x581   : > { %v1195_v50 = vcvt.s32.f32 %v1193_v28  ;;  %v1194_v0 = vcvt.s32.f32 %v1192_v63  ;;  %v1246_v28 = vld [vmem:[#allocation7 + $0x58] sm:$0xff]  ;;  %v1496_v63 = vand.u32 4294901760, %v1495_v61 }
 0x583   : > { %1196 = vmin.xlane.f32.xlu1 %v1195_v50  ;;  %2340 = vmatprep.subr.mxu1 %v1496_v63 }
 0x60c   : > { %v1197_v51 = vpop.xlane.xlu1 %1196 }
 0x60d   : > { %vm1198_vm8 = vcmp.eq.f32.partialorder %v1195_v50, %v1197_v51  ;;  %v1203_v20 = vcvt.f32.s32 %v1197_v51  ;;  %v1261_v50 = vld [vmem:[#allocation7 + $0xd0] sm:$0xff]  ;;  %v1384_v51 = vand.u32 4294901760, %v1383_v3 }
 0x60e   : > { %v1199_v15 = vsel %vm1198_vm8, %v1194_v0, inf  ;;  %v1503_v0 = vand.u32 4294901760, %v1502_v13 }
 0x60f   : > { %1200 = vmin.xlane.f32.xlu0 %v1199_v15  ;;  %v1204_v48 = vshll.u32 %v1203_v20, 16  ;;  %v1516_v15 = vsub.f32 %v3606_v16, %v4237_v43  ;;  %v1245_v20 = vld [vmem:[#allocation7 + $0x50] sm:$0xff]  ;;  %2341 = vmatpush3.msra.mxu1 %v1384_v51  ;;  %v1240_v43 = vld [vmem:[#allocation7 + $0x28] sm:$0xff] }
 0x610   : > { %v3652_v31 = vand.u32 4294901760, %v1245_v20  ;;  %2342 = vmatprep.subr.mxu1 %v1503_v0  ;;  %v3736_v10 = vand.u32 4294901760, %v1240_v43 }
 0x612   : > { %v3671_v3 = vsub.f32 %v1245_v20, %v3652_v31 }
 0x614   : > { %v4234_v63 = vand.u32 4294901760, %v3671_v3 }
 0x698   : > { %v1201_v62 = vpop.xlane.xlu0 %1200 }
 0x699   : > { %v1202_v22 = vcvt.f32.s32 %v1201_v62  ;;  %v1260_v62 = vld [vmem:[#allocation7 + $0xc8] sm:$0xff] }
 0x69a   : > { %v3654_v47 = vand.u32 4294901760, %v1260_v62 }
 0x69b   : > { %v1205_v37 = vadd.s32 %v1204_v48, %v1202_v22  ;;  %v1244_v48 = vld [vmem:[#allocation7 + $0x48] sm:$0xff]  ;;  %v1391_v22 = vand.u32 4294901760, %v1390_v44 }
 0x69c   : > { %v3656_v34 = vand.u32 4294901760, %v1244_v48  ;;  %v3674_v13 = vsub.f32 %v1260_v62, %v3654_v47 }
 0x69d   : > { %vm1206_vm9 = vcmp.eq.s32.totalorder %v3538_v40, %v1205_v37  ;;  %v1510_v37 = vand.u32 4294901760, %v1509_v53  ;;  %2343 = vmatpush3.msra.mxu1 %v1391_v22  ;;  %v3679_v53 = vand.u32 4294901760, %v1243_v29 }
 0x69e   : > { %v3558_v54 = vsel %vm1206_vm9, -inf, %v1187_v58  ;;  %v1397_v58 = vsub.f32 %v3597_v5, %v4239_v23  ;;  %v3677_v44 = vsub.f32 %v1244_v48, %v3656_v34  ;;  %v4236_v51 = vand.u32 4294901760, %v3674_v13 }
 0x69f   : > { %1208 = vmax.xlane.f32.xlu1 %v3558_v54  ;;  %2344 = vmatprep.subr.mxu1 %v1510_v37  ;;  %v1418_v37 = vsub.f32 %v3671_v3, %v4234_v63 }
 0x6a0   : > { %4390 = vst [vmem:[#allocation16_spill] sm:$0xff] %v3677_v44  ;;  %v4238_v0 = vand.u32 4294901760, %v3677_v44 }
 0x728   : > { %v1209_v21 = vpop.xlane.xlu1 %1208 }
 0x729   : > { %vm1210_vm10 = vcmp.ge.f32.partialorder %v3558_v54, %v1209_v21  ;;  %v1398_v21 = vand.u32 4294901760, %v1397_v58 }
 0x72a   : > { %v1211_v38 = vsel %vm1210_vm10, %v3538_v40, 128 }
 0x72b   : > { %v1213_v1 = vshra.s32 %v1211_v38, 16  ;;  %v1212_v27 = vand.u32 65535, %v1211_v38  ;;  %v1404_v38 = vsub.f32 %v3613_v25, %v4235_v59  ;;  %2345 = vmatpush3.msra.mxu1 %v1398_v21  ;;  %v1537_v21 = vsub.f32 %v3674_v13, %v4236_v51  ;;  %v1241_v59 = vld [vmem:[#allocation7 + $0x30] sm:$0xff]  ;;  %v1256_v51 = vld [vmem:[#allocation7 + $0xa8] sm:$0xff] }
 0x72d   : > { %v1215_v49 = vcvt.s32.f32 %v1213_v1  ;;  %v1214_v56 = vcvt.s32.f32 %v1212_v27  ;;  %v1259_v1 = vld [vmem:[#allocation7 + $0xc0] sm:$0xff]  ;;  %v3646_v27 = vand.u32 4294901760, %v1262_v8  ;;  %v1405_v35 = vand.u32 4294901760, %v1404_v38 }
 0x72e   : > { %v3667_v61 = vand.u32 4294901760, %v1259_v1  ;;  %v1425_v38 = vsub.f32 %v3677_v44, %v4238_v0  ;;  %v1419_v0 = vand.u32 4294901760, %v1418_v37  ;;  %v1538_v23 = vand.u32 4294901760, %v1537_v21 }
 0x72f   : > { %1216 = vmin.xlane.f32.xlu0 %v1215_v49  ;;  %v3659_v42 = vsub.f32 %v1262_v8, %v3646_v27  ;;  %2313 = vmatprep.subr.mxu0 %v3646_v27  ;;  %v3732_v21 = vand.u32 4294901760, %v1241_v59 }
 0x730   : > { %v1426_v18 = vand.u32 4294901760, %v1425_v38  ;;  %v3734_v38 = vand.u32 4294901760, %v1256_v51 }
 0x731   : > { %v4233_v58 = vand.u32 4294901760, %v3659_v42 }
 0x732   : > { %4393 = vst [vmem:[#allocation19_spill] sm:$0xff] %v3734_v38 }
 0x733   : > { %v1523_v20 = vsub.f32 %v3659_v42, %v4233_v58 }
 0x7b8   : > { %v3563_v55 = vpop.xlane.xlu0 %1216 }
 0x7b9   : > { %vm1218_vm11 = vcmp.eq.f32.partialorder %v1215_v49, %v3563_v55  ;;  %v1517_v49 = vand.u32 4294901760, %v1516_v15  ;;  %v3693_v15 = vsub.f32 %v1243_v29, %v3679_v53  ;;  %v1242_v29 = vld [vmem:[#allocation7 + $0x38] sm:$0xff] }
 0x7ba   : > { %v1219_v9 = vsel %vm1218_vm11, %v1214_v56, inf  ;;  %v3648_v56 = vand.u32 4294901760, %v1246_v28 }
 0x7bb   : > { %1220 = vmin.xlane.f32.xlu1 %v1219_v9  ;;  %v3650_v9 = vand.u32 4294901760, %v1261_v50  ;;  %4392 = vst [vmem:[#allocation18_spill] sm:$0xff] %v3693_v15  ;;  %2346 = vmatprep.subr.mxu1 %v1517_v49  ;;  %v1258_v49 = vld [vmem:[#allocation7 + $0xb8] sm:$0xff] }
 0x7bc   : > { %v3662_v32 = vsub.f32 %v1246_v28, %v3648_v56  ;;  %2314 = vmatpush3.msra.mxu0 %v3648_v56  ;;  %2347 = vmatpush3.msra.mxu1 %v1405_v35  ;;  %v1524_v35 = vand.u32 4294901760, %v1523_v20 }
 0x7bd   : > { %v3665_v36 = vsub.f32 %v1261_v50, %v3650_v9  ;;  %v3686_v50 = vsub.f32 %v1259_v1, %v3667_v61  ;;  %2315 = vmatprep.subr.mxu0 %v3650_v9  ;;  %v4246_v1 = vand.u32 4294901760, %v3693_v15 }
 0x7be   : > { %v4232_v8 = vand.u32 4294901760, %v3662_v32  ;;  %2316 = vmatpush3.msra.mxu0 %v3652_v31  ;;  %2348 = vmatprep.subr.mxu1 %v1524_v35 }
 0x7bf   : > { %v4231_v28 = vand.u32 4294901760, %v3665_v36  ;;  %4391 = vst [vmem:[#allocation17_spill] sm:$0xff] %v3686_v50  ;;  %v4243_v22 = vand.u32 4294901760, %v3686_v50  ;;  %2317 = vmatprep.subr.mxu0 %v3654_v47  ;;  %v1432_v17 = vsub.f32 %v3693_v15, %v4246_v1  ;;  %v3747_v15 = vand.u32 4294901760, %v1255_v12 }
 0x7c0   : > { %v1411_v62 = vsub.f32 %v3662_v32, %v4232_v8  ;;  %2318 = vmatpush3.msra.mxu0 %v3656_v34 }
 0x7c1   : > { %v1530_v48 = vsub.f32 %v3665_v36, %v4231_v28  ;;  %v1257_v28 = vld [vmem:[#allocation7 + $0xb0] sm:$0xff]  ;;  %v1544_v63 = vsub.f32 %v3686_v50, %v4243_v22  ;;  %2319 = vmatprep.subr.mxu0 %v3667_v61  ;;  %v1433_v37 = vand.u32 4294901760, %v1432_v17  ;;  %v3751_v17 = vsub.f32 %v1241_v59, %v3732_v21 }
 0x7c2   : > { %v1412_v8 = vand.u32 4294901760, %v1411_v62  ;;  %2320 = vmatpush3.msra.mxu0 %v3679_v53  ;;  %v3726_v62 = vand.u32 4294901760, %v1258_v49  ;;  %v3730_v22 = vand.u32 4294901760, %v1257_v28  ;;  %v3766_v59 = vsub.f32 %v1255_v12, %v3747_v15 }
 0x7c3   : > { %v1531_v58 = vand.u32 4294901760, %v1530_v48  ;;  %v1545_v20 = vand.u32 4294901760, %v1544_v63  ;;  %v3728_v48 = vand.u32 4294901760, %v1242_v29 }
 0x7c4   : > { %2349 = vmatpush3.msra.mxu1 %v1412_v8  ;;  %v3739_v1 = vsub.f32 %v1258_v49, %v3726_v62  ;;  %v3745_v35 = vsub.f32 %v1257_v28, %v3730_v22  ;;  %2321 = vmatprep.subr.mxu0 %v3726_v62  ;;  %v3754_v8 = vsub.f32 %v1256_v51, %v3734_v38  ;;  %v3759_v49 = vand.u32 4294901760, %v1239_v11 }
 0x7c5   : > { %2350 = vmatprep.subr.mxu1 %v1531_v58  ;;  %v3742_v63 = vsub.f32 %v1242_v29, %v3728_v48  ;;  %v3757_v58 = vsub.f32 %v1240_v43, %v3736_v10  ;;  %2322 = vmatpush3.msra.mxu0 %v3728_v48  ;;  %4399 = vst [vmem:[#allocation28_spill] sm:$0xff] %v3766_v59  ;;  %v4264_v43 = vand.u32 4294901760, %v3751_v17 }
 0x7c6   : > { %4394 = vst [vmem:[#allocation20_spill] sm:$0xff] %v3739_v1  ;;  %4396 = vst [vmem:[#allocation22_spill] sm:$0xff] %v3745_v35  ;;  %2351 = vmatpush3.msra.mxu1 %v1419_v0  ;;  %v4251_v28 = vand.u32 4294901760, %v3739_v1  ;;  %v4257_v0 = vand.u32 4294901760, %v3745_v35  ;;  %2323 = vmatprep.subr.mxu0 %v3730_v22 }
 0x7c7   : > { %4395 = vst [vmem:[#allocation21_spill] sm:$0xff] %v3742_v63  ;;  %4397 = vst [vmem:[#allocation23_spill] sm:$0xff] %v3754_v8  ;;  %2352 = vmatprep.subr.mxu1 %v1538_v23  ;;  %v4254_v29 = vand.u32 4294901760, %v3742_v63  ;;  %v3773_v23 = vsub.f32 %v1239_v11, %v3759_v49  ;;  %2324 = vmatpush3.msra.mxu0 %v3732_v21  ;;  %v1446_v11 = vsub.f32 %v3751_v17, %v4264_v43 }
 0x7c8   : > { %4398 = vst [vmem:[#allocation24_spill] sm:$0xff] %v3757_v58  ;;  %2353 = vmatpush3.msra.mxu1 %v1426_v18  ;;  %v1551_v12 = vsub.f32 %v3739_v1, %v4251_v28  ;;  %v1558_v51 = vsub.f32 %v3745_v35, %v4257_v0  ;;  %2325 = vmatprep.subr.mxu0 %v3734_v38  ;;  %v4402_v1 = vand.u32 4294901760, %v3757_v58  ;;  %v1254_v0 = vld [vmem:[#allocation7 + $0x98] sm:$0xff]  ;;  %v4403_v38 = vand.u32 4294901760, %v3766_v59 }
 0x7c9   : > { %4400 = vst [vmem:[#allocation29_spill] sm:$0xff] %v3773_v23  ;;  %2354 = vmatprep.subr.mxu1 %v1545_v20  ;;  %v1439_v18 = vsub.f32 %v3742_v63, %v4254_v29  ;;  %v4401_v20 = vand.u32 4294901760, %v3754_v8  ;;  %v4269_v63 = vand.u32 4294901760, %v3773_v23  ;;  %v1238_v35 = vld [vmem:[#allocation7 + $0x18] sm:$0xff]  ;;  %2326 = vmatpush3.msra.mxu0 %v3736_v10 }
 0x7ca   : > { %2355 = vmatpush3.msra.mxu1 %v1433_v37  ;;  %v1453_v29 = vsub.f32 %v3757_v58, %v4402_v1  ;;  %v1552_v50 = vand.u32 4294901760, %v1551_v12  ;;  %v1559_v44 = vand.u32 4294901760, %v1558_v51  ;;  %v1572_v43 = vsub.f32 %v3766_v59, %v4403_v38  ;;  %2327 = vmatprep.subr.mxu0 %v3747_v15 }
 0x7cb   : > { %v1565_v28 = vsub.f32 %v3754_v8, %v4401_v20  ;;  %v1440_v37 = vand.u32 4294901760, %v1439_v18  ;;  %v1447_v20 = vand.u32 4294901760, %v1446_v11  ;;  %v1460_v1 = vsub.f32 %v3773_v23, %v4269_v63  ;;  %2328 = vmatpush3.msra.mxu0 %v3759_v49 }
 0x7cc   : > { %2356 = vmatprep.subr.mxu1 %v1552_v50  ;;  %v3806_v8 = vand.u32 4294901760, %v1254_v0  ;;  %v3808_v12 = vand.u32 4294901760, %v1238_v35  ;;  %v1454_v51 = vand.u32 4294901760, %v1453_v29  ;;  %v1573_v18 = vand.u32 4294901760, %v1572_v43 }
 0x7cd   : > { %v1566_v58 = vand.u32 4294901760, %v1565_v28  ;;  %2357 = vmatpush3.msra.mxu1 %v1440_v37  ;;  %v1461_v63 = vand.u32 4294901760, %v1460_v1 }
 0x7ce   : > { %2358 = vmatprep.subr.mxu1 %v1559_v44  ;;  %v3811_v38 = vsub.f32 %v1254_v0, %v3806_v8  ;;  %v3814_v11 = vsub.f32 %v1238_v35, %v3808_v12  ;;  %2329 = vmatprep.subr.mxu0 %v3806_v8 }
 0x7cf   : > { %2359 = vmatpush3.msra.mxu1 %v1447_v20  ;;  %2330 = vmatpush3.msra.mxu0 %v3808_v12 }
 0x7d0   : > { %4404 = vst [vmem:[#allocation30_spill] sm:$0xff] %v3811_v38  ;;  %4405 = vst [vmem:[#allocation31_spill] sm:$0xff] %v3814_v11  ;;  %2360 = vmatprep.subr.mxu1 %v1566_v58  ;;  %v4270_v50 = vand.u32 4294901760, %v3811_v38  ;;  %v4271_v28 = vand.u32 4294901760, %v3814_v11  ;;  %v1223_v58 = vcvt.f32.s32 %v3563_v55 }
 0x7d1   : > { %2361 = vmatpush3.msra.mxu1 %v1454_v51 }
 0x7d2   : > { %2362 = vmatprep.subr.mxu1 %v1573_v18  ;;  %v1579_v44 = vsub.f32 %v3811_v38, %v4270_v50  ;;  %v1467_v35 = vsub.f32 %v3814_v11, %v4271_v28  ;;  %v1224_v37 = vshll.u32 %v1223_v58, 16  ;;  %v1253_v18 = vld [vmem:[#allocation7 + $0x90] sm:$0xff] }
 0x7d3   : > { %2363 = vmatpush3.msra.mxu1 %v1461_v63  ;;  %v3829_v50 = vand.u32 4294901760, %v1253_v18  ;;  %v1237_v28 = vld [vmem:[#allocation7 + $0x10] sm:$0xff] }
 0x7d4   : > { %v1580_v29 = vand.u32 4294901760, %v1579_v44  ;;  %v1468_v0 = vand.u32 4294901760, %v1467_v35  ;;  %v3831_v63 = vand.u32 4294901760, %v1237_v28  ;;  %v1252_v44 = vld [vmem:[#allocation7 + $0x88] sm:$0xff] }
 0x7d5   : > { %v3834_v35 = vsub.f32 %v1253_v18, %v3829_v50  ;;  %v3836_v55 = vand.u32 4294901760, %v1252_v44  ;;  %2331 = vmatprep.subr.mxu0 %v3829_v50 }
 0x7d6   : > { %2364 = vmatprep.subr.mxu1 %v1580_v29  ;;  %v1236_v29 = vld [vmem:[#allocation7 + $0x8] sm:$0xff]  ;;  %2332 = vmatpush3.msra.mxu0 %v3831_v63 }
 0x7d7   : > { %2365 = vmatpush3.msra.mxu1 %v1468_v0  ;;  %4406 = vst [vmem:[#allocation33_spill] sm:$0xff] %v3834_v35  ;;  %v1251_v0 = vld [vmem:[#allocation7 + $0x80] sm:$0xff]  ;;  %v4280_v58 = vand.u32 4294901760, %v3834_v35  ;;  %2333 = vmatprep.subr.mxu0 %v3836_v55 }
 0x7d9   : > { %v1586_v18 = vsub.f32 %v3834_v35, %v4280_v58 }
 0x7db   : > { %v1587_v59 = vand.u32 4294901760, %v1586_v18 }
 0x7dd   : > { %2366 = vmatprep.subr.mxu1 %v1587_v59 }
 0x844   : > { %v1221_v43 = vpop.xlane.xlu1 %1220 }
 0x845   : > { %v1222_v20 = vcvt.f32.s32 %v1221_v43  ;;  %v3847_v43 = vsub.f32 %v1252_v44, %v3836_v55 }
 0x847   : > { %v1225_v1 = vadd.s32 %v1224_v37, %v1222_v20  ;;  %v3849_v37 = vand.u32 4294901760, %v1251_v0  ;;  %v1235_v20 = vld [vmem:[#allocation7] sm:$0xff]  ;;  %v4288_v44 = vand.u32 4294901760, %v3847_v43 }
 0x849   : > { %vm1226_vm12 = vcmp.eq.s32.totalorder %v3538_v40, %v1225_v1  ;;  %v3840_v40 = vsub.f32 %v1237_v28, %v3831_v63  ;;  %v3864_v11 = vsub.f32 %v1251_v0, %v3849_v37  ;;  %v1593_v58 = vsub.f32 %v3847_v43, %v4288_v44 }
 0x84a   : > { %v1227_v51 = vsel %vm1226_vm12, -inf, %v3558_v54  ;;  %v3842_v54 = vand.u32 4294901760, %v1236_v29 }
 0x84b   : > { %1228 = vmax.xlane.f32.xlu0 %v1227_v51  ;;  %4407 = vst [vmem:[#allocation25_spill] sm:$0xff] %v3840_v40  ;;  %v4283_v1 = vand.u32 4294901760, %v3840_v40  ;;  %v3856_v51 = vand.u32 4294901760, %v1235_v20  ;;  %v4290_v0 = vand.u32 4294901760, %v3864_v11 }
 0x84c   : > { %v3854_v28 = vsub.f32 %v1236_v29, %v3842_v54  ;;  %2334 = vmatpush3.msra.mxu0 %v3842_v54 }
 0x84d   : > { %4408 = vst [vmem:[#allocation26_spill] sm:$0xff] %v3856_v51  ;;  %2335 = vmatprep.subr.mxu0 %v3849_v37  ;;  %v1474_v29 = vsub.f32 %v3840_v40, %v4283_v1  ;;  %v3872_v23 = vsub.f32 %v1235_v20, %v3856_v51  ;;  %v1594_v20 = vand.u32 4294901760, %v1593_v58  ;;  %v1600_v18 = vsub.f32 %v3864_v11, %v4290_v0 }
 0x84e   : > { %v4292_v38 = vand.u32 4294901760, %v3854_v28  ;;  %2336 = vmatpush3.msra.mxu0 %v3856_v51 }
 0x84f   : > { %2375 = vmatprep.subr.mxu0 %v3579_v7  ;;  %v1475_v35 = vand.u32 4294901760, %v1474_v29  ;;  %v4291_v40 = vand.u32 4294901760, %v3872_v23  ;;  %v1601_v29 = vand.u32 4294901760, %v1600_v18  ;;  %v4410_v18 = vld [vmem:[#allocation19_spill] sm:$0xff] }
 0x850   : > { %v1481_v1 = vsub.f32 %v3854_v28, %v4292_v38  ;;  %v4422_v38 = vld [vmem:[#allocation30_spill] sm:$0xff] }
 0x851   : > { %2367 = vmatpush3.msra.mxu1 %v1475_v35  ;;  %v1488_v44 = vsub.f32 %v3872_v23, %v4291_v40 }
 0x852   : > { %v1482_v51 = vand.u32 4294901760, %v1481_v1  ;;  %2368 = vmatprep.subr.mxu1 %v1594_v20 }
 0x853   : > { %v1489_v7 = vand.u32 4294901760, %v1488_v44 }
 0x854   : > { %2369 = vmatpush3.msra.mxu1 %v1482_v51 }
 0x855   : > { %2370 = vmatprep.subr.mxu1 %v1601_v29  ;;  %v4411_v29 = vld [vmem:[#allocation16_spill] sm:$0xff] }
 0x856   : > { %2371 = vmatpush3.msra.mxu1 %v1489_v7 }
 0x857   : > { %2410 = vmatprep.subr.mxu1 %v3566_v52 }
 0x8d4   : > { %v1229_v59 = vpop.xlane.xlu0 %1228 }
 0x8d5   : > { %vm1230_vm13 = vcmp.ge.f32.partialorder %v3547_v19, %v1229_v59  ;;  %v4412_v59 = vld [vmem:[#allocation17_spill] sm:$0xff] }
 0x8d6   : > { %v2298_v58 = vsel %vm1230_vm13, 1.0, %v4333_v33 }
 0x8d7   : > { %v1233_v35 = vmul.f32 %v2298_v58, %v3536_v57  ;;  %v1234_v1 = vmul.f32 %v2298_v58, %v3540_v45  ;;  %v4413_v58 = vld [vmem:[#allocation18_spill] sm:$0xff] }
 0x8d9   : > { %v3895_v0 = vand.u32 4294901760, %v1234_v1  ;;  %v3897_v40 = vand.u32 4294901760, %v1233_v35 }
 0x8db   : > { %4409 = vst [vmem:[#allocation34_spill] sm:$0xff] %v3897_v40  ;;  %v1364_v51 = vsub.f32 %v1234_v1, %v3895_v0  ;;  %v3901_v44 = vsub.f32 %v1233_v35, %v3897_v40  ;;  %1604 = vmatprep.mubr.f32.mxu1 %v3895_v0  ;;  %v4414_v35 = vld [vmem:[#allocation20_spill] sm:$0xff]  ;;  %v4415_v1 = vld [vmem:[#allocation21_spill] sm:$0xff] }
 0x8dc   : > { %1606 = vmatmul.mubr.f32.vlgmr.msra.gmra.mxu1 %v3897_v40  ;;  %v4423_v40 = vld [vmem:[#allocation31_spill] sm:$0xff] }
 0x8dd   : > { %v1371_v19 = vand.u32 4294901760, %v3901_v44  ;;  %2411 = vmatpush3.msra.mxu1 %v3568_v14  ;;  %v1365_v33 = vand.u32 4294901760, %v1364_v51 }
 0x8de   : > { %2412 = vmatprep.subr.mxu1 %v3570_v39 }
 0x8df   : > { %2413 = vmatpush3.msra.mxu1 %v3572_v30  ;;  %1848 = vmatprep.mubr.f32.mxu1 %v1365_v33  ;;  %v1366_v57 = vsub.f32 %v1364_v51, %v1365_v33  ;;  %v1372_v45 = vsub.f32 %v3901_v44, %v1371_v19  ;;  %v4417_v33 = vld [vmem:[#allocation23_spill] sm:$0xff] }
 0x8e0   : > { %2414 = vmatprep.subr.mxu1 %v3574_v24 }
 0x8e1   : > { %2415 = vmatpush3.msra.mxu1 %v3576_v26  ;;  %v1367_v7 = vand.u32 4294901760, %v1366_v57  ;;  %v1373_v20 = vand.u32 4294901760, %v1372_v45  ;;  %v4418_v57 = vld [vmem:[#allocation24_spill] sm:$0xff] }
 0x8e2   : > { %2416 = vmatprep.subr.mxu1 %v3587_v60  ;;  %v4419_v45 = vld [vmem:[#allocation28_spill] sm:$0xff] }
 0x8e3   : > { %2417 = vmatpush3.msra.mxu1 %v3599_v6  ;;  %1368 = vmatprep.mubr.f32.mxu0 %v1367_v7  ;;  %v4420_v7 = vld [vmem:[#allocation29_spill] sm:$0xff] }
 0x8e4   : > { %2418 = vmatprep.subr.mxu1 %v3646_v27  ;;  %1374 = vmatmul.mubr.f32.vlgmr.msra.gmra.mxu0 %v1373_v20  ;;  %v4421_v20 = vld [vmem:[#allocation26_spill] sm:$0xff] }
 0x8e5   : > { %2376 = vmatpush3.msra.mxu0 %v3582_v41  ;;  %2419 = vmatpush3.msra.mxu1 %v3648_v56 }
 0x8e6   : > { %2377 = vmatprep.subr.mxu0 %v3585_v46  ;;  %1741 = vmatprep.mubr.f32.mxu0 %v1364_v51  ;;  %v4416_v51 = vld [vmem:[#allocation22_spill] sm:$0xff] }
 0x8e7   : > { %2420 = vmatprep.subr.mxu1 %v3650_v9  ;;  %2378 = vmatpush3.msra.mxu0 %v3591_v2 }
 0x8e8   : > { %2421 = vmatpush3.msra.mxu1 %v3652_v31  ;;  %2379 = vmatprep.subr.mxu0 %v3594_v4 }
 0x8e9   : > { %2422 = vmatprep.subr.mxu1 %v3654_v47  ;;  %2380 = vmatpush3.msra.mxu0 %v3597_v5 }
 0x8ea   : > { %2423 = vmatpush3.msra.mxu1 %v3656_v34  ;;  %2381 = vmatprep.subr.mxu0 %v3606_v16 }
 0x8eb   : > { %2424 = vmatprep.subr.mxu1 %v3667_v61  ;;  %2382 = vmatpush3.msra.mxu0 %v3613_v25 }
 0x8ec   : > { %2425 = vmatpush3.msra.mxu1 %v3679_v53  ;;  %2383 = vmatprep.subr.mxu0 %v3659_v42 }
 0x8ed   : > { %2426 = vmatprep.subr.mxu1 %v3726_v62  ;;  %2384 = vmatpush3.msra.mxu0 %v3662_v32 }
 0x8ee   : > { %2427 = vmatpush3.msra.mxu1 %v3728_v48  ;;  %2385 = vmatprep.subr.mxu0 %v3665_v36 }
 0x8ef   : > { %2428 = vmatprep.subr.mxu1 %v3730_v22  ;;  %2386 = vmatpush3.msra.mxu0 %v3671_v3 }
 0x8f0   : > { %2429 = vmatpush3.msra.mxu1 %v3732_v21  ;;  %2387 = vmatprep.subr.mxu0 %v3674_v13 }
 0x8f1   : > { %2430 = vmatprep.subr.mxu1 %v4410_v18  ;;  %2388 = vmatpush3.msra.mxu0 %v4411_v29 }
 0x8f2   : > { %2431 = vmatpush3.msra.mxu1 %v3736_v10  ;;  %2389 = vmatprep.subr.mxu0 %v4412_v59 }
 0x8f3   : > { %2432 = vmatprep.subr.mxu1 %v3747_v15  ;;  %2390 = vmatpush3.msra.mxu0 %v4413_v58 }
 0x8f4   : > { %2433 = vmatpush3.msra.mxu1 %v3759_v49  ;;  %2391 = vmatprep.subr.mxu0 %v4414_v35 }
 0x8f5   : > { %2434 = vmatprep.subr.mxu1 %v3806_v8  ;;  %2392 = vmatpush3.msra.mxu0 %v4415_v1 }
 0x8f6   : > { %2435 = vmatpush3.msra.mxu1 %v3808_v12  ;;  %2393 = vmatprep.subr.mxu0 %v4416_v51 }
 0x8f7   : > { %2436 = vmatprep.subr.mxu1 %v3829_v50  ;;  %2394 = vmatpush3.msra.mxu0 %v3751_v17 }
 0x8f8   : > { %2437 = vmatpush3.msra.mxu1 %v3831_v63  ;;  %2395 = vmatprep.subr.mxu0 %v4417_v33 }
 0x8f9   : > { %2438 = vmatprep.subr.mxu1 %v3836_v55  ;;  %2396 = vmatpush3.msra.mxu0 %v4418_v57 }
 0x8fa   : > { %2439 = vmatpush3.msra.mxu1 %v3842_v54  ;;  %2397 = vmatprep.subr.mxu0 %v4419_v45  ;;  %v4424_v45 = vld [vmem:[#allocation33_spill] sm:$0xff] }
 0x8fb   : > { %2440 = vmatprep.subr.mxu1 %v3849_v37  ;;  %2398 = vmatpush3.msra.mxu0 %v4420_v7  ;;  %v4425_v7 = vld [vmem:[#allocation25_spill] sm:$0xff] }
 0x8fc   : > { %2441 = vmatpush3.msra.mxu1 %v4421_v20  ;;  %2399 = vmatprep.subr.mxu0 %v4422_v38 }
 0x8fd   : > { %1852 = vmatmul.mubr.f32.vlgmr.msra.gmra.mxu1 %v1371_v19  ;;  %2480 = vmatprep.subr.mxu1 %v3566_v52  ;;  %v4426_v52 = vld [vmem:[#allocation15_spill] sm:$0xff] }
 0x8fe   : > { %2400 = vmatpush3.msra.mxu0 %v4423_v40  ;;  %2481 = vmatpush3.msra.mxu1 %v3568_v14  ;;  %v4427_v14 = vand.u32 4294901760, %v4426_v52 }
 0x8ff   : > { %2122 = vmatprep.mubr.f32.mxu1 %v3895_v0  ;;  %2401 = vmatprep.subr.mxu0 %v4424_v45 }
 0x900   : > { %2482 = vmatprep.subr.mxu1 %v3570_v39  ;;  %2402 = vmatpush3.msra.mxu0 %v4425_v7  ;;  %v4428_v39 = vand.u32 4294901760, %v3582_v41  ;;  %v4432_v41 = vand.u32 4294901760, %v3597_v5  ;;  %v4437_v5 = vand.u32 4294901760, %v3665_v36 }
 0x901   : > { %2483 = vmatpush3.msra.mxu1 %v3572_v30  ;;  %2403 = vmatprep.subr.mxu0 %v3847_v43  ;;  %v4429_v30 = vand.u32 4294901760, %v3585_v46  ;;  %v4433_v46 = vand.u32 4294901760, %v3606_v16  ;;  %v4439_v16 = vand.u32 4294901760, %v3674_v13  ;;  %v4453_v13 = vand.u32 4294901760, %v4422_v38 }
 0x902   : > { %2484 = vmatprep.subr.mxu1 %v3574_v24  ;;  %2404 = vmatpush3.msra.mxu0 %v3854_v28  ;;  %v4430_v24 = vand.u32 4294901760, %v3591_v2  ;;  %v4435_v2 = vand.u32 4294901760, %v3659_v42  ;;  %v4448_v42 = vand.u32 4294901760, %v4418_v57 }
 0x903   : > { %2485 = vmatpush3.msra.mxu1 %v3576_v26  ;;  %2405 = vmatprep.subr.mxu0 %v3864_v11  ;;  %v4431_v26 = vand.u32 4294901760, %v3594_v4  ;;  %v4436_v4 = vand.u32 4294901760, %v3662_v32  ;;  %v4449_v32 = vld [vmem:[#allocation28_spill] sm:$0xff] }
 0x904   : > { %2486 = vmatprep.subr.mxu1 %v3587_v60  ;;  %2406 = vmatpush3.msra.mxu0 %v3872_v23  ;;  %v4434_v60 = vand.u32 4294901760, %v3613_v25  ;;  %v4440_v25 = vand.u32 4294901760, %v4411_v29  ;;  %v4450_v36 = vand.u32 4294901760, %v4449_v32 }
 0x905   : > { %2487 = vmatpush3.msra.mxu1 %v3599_v6  ;;  %1744 = vmatmul.mubr.f32.vlgmr.msra.gmra.mxu0 %v3901_v44  ;;  %v4438_v6 = vand.u32 4294901760, %v3671_v3 }
 0x906   : > { %2445 = vmatprep.subr.mxu0 %v4427_v14  ;;  %2488 = vmatprep.subr.mxu1 %v3646_v27  ;;  %v4441_v27 = vand.u32 4294901760, %v4412_v59 }
 0x907   : > { %2446 = vmatpush3.msra.mxu0 %v4428_v39  ;;  %2018 = vmatprep.mubr.f32.mxu0 %v3895_v0 }
 0x908   : > { %2489 = vmatpush3.msra.mxu1 %v3648_v56  ;;  %2447 = vmatprep.subr.mxu0 %v4429_v30  ;;  %v4442_v56 = vand.u32 4294901760, %v4413_v58 }
 0x909   : > { %2490 = vmatprep.subr.mxu1 %v3650_v9  ;;  %2448 = vmatpush3.msra.mxu0 %v4430_v24  ;;  %v4443_v9 = vand.u32 4294901760, %v4414_v35 }
 0x90a   : > { %2491 = vmatpush3.msra.mxu1 %v3652_v31  ;;  %2449 = vmatprep.subr.mxu0 %v4431_v26  ;;  %v4444_v31 = vand.u32 4294901760, %v4415_v1 }
 0x90b   : > { %2492 = vmatprep.subr.mxu1 %v3654_v47  ;;  %2450 = vmatpush3.msra.mxu0 %v4432_v41  ;;  %v4446_v47 = vand.u32 4294901760, %v3751_v17  ;;  %v4460_v17 = vand.u32 4294901760, %v3864_v11 }
 0x90c   : > { %2493 = vmatpush3.msra.mxu1 %v3656_v34  ;;  %2451 = vmatprep.subr.mxu0 %v4433_v46  ;;  %v4447_v34 = vand.u32 4294901760, %v4417_v33  ;;  %v2592_v33 = vld [vmem:[%s215_s12] sm:$0xff] }
 0x90d   : > { %2494 = vmatprep.subr.mxu1 %v3667_v61  ;;  %2452 = vmatpush3.msra.mxu0 %v4434_v60  ;;  %v4451_v61 = vld [vmem:[#allocation29_spill] sm:$0xff] }
 0x90e   : > { %2495 = vmatpush3.msra.mxu1 %v3679_v53  ;;  %2453 = vmatprep.subr.mxu0 %v4435_v2  ;;  %v4452_v3 = vand.u32 4294901760, %v4451_v61  ;;  %v4454_v53 = vld [vmem:[#allocation34_spill] sm:$0xff] }
 0x90f   : > { %2496 = vmatprep.subr.mxu1 %v3726_v62  ;;  %2454 = vmatpush3.msra.mxu0 %v4436_v4  ;;  %v4457_v62 = vand.u32 4294901760, %v4425_v7 }
 0x910   : > { %2497 = vmatpush3.msra.mxu1 %v3728_v48  ;;  %2455 = vmatprep.subr.mxu0 %v4437_v5  ;;  %v4458_v48 = vand.u32 4294901760, %v3847_v43 }
 0x911   : > { %2498 = vmatprep.subr.mxu1 %v3730_v22  ;;  %2456 = vmatpush3.msra.mxu0 %v4438_v6  ;;  %v4456_v22 = vand.u32 4294901760, %v4424_v45 }
 0x912   : > { %2499 = vmatpush3.msra.mxu1 %v3732_v21  ;;  %2457 = vmatprep.subr.mxu0 %v4439_v16  ;;  %v4459_v21 = vand.u32 4294901760, %v3854_v28 }
 0x913   : > { %2500 = vmatprep.subr.mxu1 %v4410_v18  ;;  %2458 = vmatpush3.msra.mxu0 %v4440_v25 }
 0x914   : > { %2501 = vmatpush3.msra.mxu1 %v3736_v10  ;;  %2459 = vmatprep.subr.mxu0 %v4441_v27  ;;  %v4445_v10 = vand.u32 4294901760, %v4416_v51 }
 0x915   : > { %2502 = vmatprep.subr.mxu1 %v3747_v15  ;;  %2460 = vmatpush3.msra.mxu0 %v4442_v56  ;;  %v4455_v15 = vand.u32 4294901760, %v4423_v40 }
 0x916   : > { %2503 = vmatpush3.msra.mxu1 %v3759_v49  ;;  %2461 = vmatprep.subr.mxu0 %v4443_v9 }
 0x917   : > { %2504 = vmatprep.subr.mxu1 %v3806_v8  ;;  %2462 = vmatpush3.msra.mxu0 %v4444_v31  ;;  %v4461_v8 = vand.u32 4294901760, %v3872_v23 }
 0x918   : > { %2505 = vmatpush3.msra.mxu1 %v3808_v12  ;;  %2463 = vmatprep.subr.mxu0 %v4445_v10 }
 0x919   : > { %2506 = vmatprep.subr.mxu1 %v3829_v50  ;;  %2464 = vmatpush3.msra.mxu0 %v4446_v47 }
 0x91a   : > { %2507 = vmatpush3.msra.mxu1 %v3831_v63  ;;  %2465 = vmatprep.subr.mxu0 %v4447_v34 }
 0x91b   : > { %2508 = vmatprep.subr.mxu1 %v3836_v55  ;;  %2466 = vmatpush3.msra.mxu0 %v4448_v42 }
 0x91c   : > { %2509 = vmatpush3.msra.mxu1 %v3842_v54  ;;  %2467 = vmatprep.subr.mxu0 %v4450_v36 }
 0x91d   : > { %2510 = vmatprep.subr.mxu1 %v3849_v37  ;;  %2468 = vmatpush3.msra.mxu0 %v4452_v3 }
 0x91e   : > { %2511 = vmatpush3.msra.mxu1 %v4421_v20  ;;  %2469 = vmatprep.subr.mxu0 %v4453_v13 }
 0x91f   : > { %2124 = vmatmul.mubr.f32.vlgmr.msra.gmra.mxu1 %v4454_v53  ;;  %2470 = vmatpush3.msra.mxu0 %v4455_v15 }
 0x920   : > { %2471 = vmatprep.subr.mxu0 %v4456_v22 }
 0x921   : > { %2472 = vmatpush3.msra.mxu0 %v4457_v62 }
 0x922   : > { %2473 = vmatprep.subr.mxu0 %v4458_v48 }
 0x923   : > { %2474 = vmatpush3.msra.mxu0 %v4459_v21 }
 0x924   : > { %2475 = vmatprep.subr.mxu0 %v4460_v17 }
 0x925   : > { %2476 = vmatpush3.msra.mxu0 %v4461_v8 }
 0x926   : > { %2020 = vmatmul.mubr.f32.vlgmr.msra.gmra.mxu0 %v4454_v53 }
 0x99c   : > { %v2372_v12 = vpop.f32.mrf.mxu1 }
 0x99e   : > { %v2373_v63 = vpop.f32.mrf.mxu1 }
 0x99f   : > { %v2374_v43 = vadd.f32 %v2373_v63, %v2372_v12 }
 0x9a4   : > { %v2337_v49 = vpop.f32.mrf.mxu0 }
 0x9a6   : > { %v2338_v38 = vpop.f32.mrf.mxu0 }
 0x9a7   : > { %v2339_v54 = vadd.f32 %v2338_v38, %v2337_v49 }
 0x9a9   : > { %v1608_v28 = vadd.f32 %v2374_v43, %v2339_v54 }
 0x9bd   : > { %v2442_v55 = vpop.f32.mrf.mxu1 }
 0x9bf   : > { %v2443_v11 = vpop.f32.mrf.mxu1 }
 0x9c0   : > { %v2444_v19 = vadd.f32 %v2443_v11, %v2442_v55 }
 0x9c5   : > { %v2407_v50 = vpop.f32.mrf.mxu0 }
 0x9c7   : > { %v2408_v40 = vpop.f32.mrf.mxu0 }
 0x9c8   : > { %v2409_v37 = vadd.f32 %v2408_v40, %v2407_v50 }
 0x9ca   : > { %v1746_v0 = vadd.f32 %v2409_v37, %v1608_v28 }
 0x9cc   : > { %v1854_v59 = vadd.f32 %v2444_v19, %v1746_v0 }
 0x9df   : > { %v2512_v23 = vpop.f32.mrf.mxu1 }
 0x9e1   : > { %v2513_v18 = vpop.f32.mrf.mxu1 }
 0x9e2   : > { %v2514_v35 = vadd.f32 %v2513_v18, %v2512_v23 }
 0x9e6   : > { %v2477_v44 = vpop.f32.mrf.mxu0 }
 0x9e8   : > { %v2478_v29 = vpop.f32.mrf.mxu0 }
 0x9e9   : > { %v2479_v58 = vadd.f32 %v2478_v29, %v2477_v44 }
 0x9eb   : > { %v2022_v1 = vadd.f32 %v2479_v58, %v1854_v59 }
 0x9ed   : > { %v2126_v51 = vadd.f32 %v2514_v35, %v2022_v1 }
 0x9ef   : > { %v2130_v57 = vsub.f32 %v2592_v33, %v2126_v51  ;;  %2129 = vst [vmem:[%s245_s23] sm:$0xff] %v2126_v51 }
 0x9f0   : > { %2686 = shalt.err (!%p2683_p9)
}
 0x9f1   : > { %s2687_s12 = scalar_lea.hbm %s4082_s20, 128  ;;  %s2691_s14 = scalar_lea.hbm %s4160_s3, 256 }
 0x9f2   : > { %p2688_p13 = scmp.ne.s32.totalorder %s4082_s20, %s2687_s12  ;;  %p2692_p4 = scmp.lt.s32.totalorder %s4082_s20, %s4160_s3 }
 0x9f3   : > { %p2693_p8 = scmp.lt.s32.totalorder %s2691_s14, %s2687_s12 }
 0x9f4   : > { %p2689_p5 = pnand %p2688_p13, %p4462_p0 }
 0x9f5   : > { %p2694_p7 = por %p2693_p8, %p2692_p4 }
 0x9f6   : > { %p2690_p10 = pneg %p2689_p5 }
 0x9f8   : > { %p2695_p11 = pnand %p2694_p7, %p2690_p10 }
 0x9fa   : > { %2698 = shalt.err (!%p2695_p11)
}
 0x9fb   : > { %2525 = dma.vmem_to_hbm [thread:$0]  (%p4462_p0), %s4084_s5, 128, %s4082_s20, %s2133_s26   ;;  %2131 = vst [vmem:[%s252_s7] sm:$0xff] %v2130_v57 }
 0x9fc   : > { %s2138_s29 = scalar_lea.sflag [#allocation10], %s2926_s6  ;;  %s2699_s30 = scalar_lea.vmem %s4093_s8, 128 }
 0x9fd   : > { %p2700_p1 = scmp.ne.s32.totalorder %s4093_s8, %s2699_s30  ;;  %s2782_s11 = smov [#allocation9]  }
 0x9fe   : > { %s2703_s9 = sshll.u32 %s2782_s11, 4  ;;  %s2704_s9 = int_to_ptr.vmem [resolvable:$false] %s2703_s9 }
 0x9ff   : > { %p2701_p2 = pnand %p2700_p1, %p4462_p0  ;;  %s2705_s12 = scalar_lea.vmem %s2704_s9, 256 }
 0xa00   : > { %p2706_p12 = scmp.lt.s32.totalorder %s4093_s8, %s2704_s9  ;;  %p2707_p3 = scmp.lt.s32.totalorder %s2705_s12, %s2699_s30 }
 0xa01   : > { %p2702_p6 = pneg %p2701_p2 }
 0xa02   : > { %p2708_p9 = por %p2707_p3, %p2706_p12 }
 0xa04   : > { %p2709_p13 = pnand %p2708_p9, %p2702_p6 }
 0xa06   : > { %2712 = shalt.err (!%p2709_p13)
}
 0xa07   : > { %s2713_s10 = scalar_lea.hbm %s4091_s28, 128  ;;  %s2717_s7 = scalar_lea.hbm %s4161_s4, 256 }
 0xa08   : > { %p2714_p5 = scmp.ne.s32.totalorder %s4091_s28, %s2713_s10  ;;  %p2718_p8 = scmp.lt.s32.totalorder %s4091_s28, %s4161_s4 }
 0xa09   : > { %p2719_p7 = scmp.lt.s32.totalorder %s2717_s7, %s2713_s10 }
 0xa0a   : > { %p2715_p10 = pnand %p2714_p5, %p4462_p0 }
 0xa0b   : > { %p2720_p11 = por %p2719_p7, %p2718_p8 }
 0xa0c   : > { %p2716_p4 = pneg %p2715_p10 }
 0xa0e   : > { %p2721_p1 = pnand %p2720_p11, %p2716_p4 }
 0xa10   : > { %2724 = shalt.err (!%p2721_p1)
}
 0xa11   : > { %2526 = dma.vmem_to_hbm [thread:$0]  (%p4462_p0), %s4093_s8, 128, %s4091_s28, %s2138_s29  }
 0xa12 PF: > { %s2176_s21 = sand.u32 1, %s2759_s15   ;;  %p4463_p2 = scmp.ne.s32.totalorder %s4296_s22, 0 }
 0xa13   : > { %p4464_p6 = scmp.ge.s32.totalorder %s2771_s18, 2  ;;  %s2177_s23 = scalar_lea.sflag [#allocation4], %s2176_s21 }
 0xa15   : > { %p2541_p12 = pnand %p4464_p6, %p4463_p2 }
 0xa17   : > { %p2542_p3 = pneg %p2541_p12 }
 0xa19   : > { %2750 = dma.done.wait (%p2542_p3), %s2177_s23, 128  }
 0xa1a   : > { %2752 = vsyncadd (%p2542_p3), %s2177_s23, 4294967168  ;;  %s2186_s14 = scalar_lea.sflag [#allocation10], %s2176_s21 }
 0xa1b   : > { %2754 = dma.done.wait (%p2542_p3), %s2186_s14, 128  }
 0xa1c   : > { %2756 = vsyncadd (%p2542_p3), %s2186_s14, 4294967168  ;;  %p22_p0 = scmp.ge.s32.totalorder %s2880_s13, 4   ;;  %s4465_s15 = smov %s2763_s16 }
 0xa1d   : > { %s4466_s16 = smov %s2767_s17  ;;  %s4467_s17 = smov %s2889_s24 }
 0xa1e   : > { %s4468_s18 = smov %s2880_s13  ;;  %24 = sbr.rel (!%p22_p0) target bundleno = 8 (0x8), region = 102 }
 0xa23   :  { %2191 = vsyncpa [#allocation3], 1 }
 0xa24   :  { %2193 = vsyncpa [#allocation3 + $0x1], 1 }
 0xa25   :  { %2194 = vsyncpa [#allocation6], 1 }
 0xa26   :  { %2195 = vsyncpa [#allocation4], 1 }
 0xa27   :  { %2197 = vsyncpa [#allocation4 + $0x1], 1 }
 0xa28   :  { %2198 = vsyncpa [#allocation10], 1 }
 0xa29   :  { %2200 = vsyncpa [#allocation10 + $0x1], 1 }

</bundles_post_ra>
